<compile_context>
chip_gen: v6e
topology: v6e:2x2x1
jax: 0.10.0
libtpu: 0.0.40
codegen_flags: <defaults>
</compile_context>

<pallas_src>
import math
import functools

import jax
import jax.numpy as jnp
from jax.experimental import pallas as pl
from jax.experimental.pallas import tpu as pltpu

F32 = jnp.float32
BF16 = jnp.bfloat16

# ---- model configuration (small, deterministic) ----
TOT_STEMS = 64
TOT_POS = 16
TOT_AFSETS = 32
TOT_AFFIXES = 40
MORPHO_DIM = 32            # args.morpho_dim_hidden
STEM_DIM = 128             # args.stem_dim_hidden
HIDDEN = 4 * MORPHO_DIM + STEM_DIM          # = 256 (encoder.hidden_dim)
NUM_HEADS = 4
HEAD_DIM = HIDDEN // NUM_HEADS              # 64
DIM_FFN = 512
NUM_LAYERS = 2
LN_EPS = 1e-6
REL_POS_BINS = 32
MAX_REL_POS = 15
NEG_INF = -1e9             # finite large-negative mask (avoids inf-inf -> NaN)

PRED_PROJ = STEM_DIM + 3 * MORPHO_DIM                       # 224
PRED_OUT = TOT_STEMS + TOT_POS + TOT_AFSETS + TOT_AFFIXES   # 152
PRED_PROJ_PAD = 256                                         # lane-dense padding
PRED_OUT_PAD = 256                                          # lane-dense padding


# =======================  Pallas kernel  =======================

def _layer_norm(x, g, b, eps):
    mu = jnp.mean(x, axis=-1, keepdims=True)
    xc = x - mu
    var = jnp.mean(xc * xc, axis=-1, keepdims=True)
    return xc * jax.lax.rsqrt(var + eps) * g + b


def _gpt_stack_kernel(x0_ref, bias_ref,
                      wqkv_ref, bqkv_ref, wo_ref, bo_ref,
                      ln1g_ref, ln1b_ref,
                      w1_ref, b1_ref, w2_ref, b2_ref,
                      ln2g_ref, ln2b_ref,
                      plg_ref, plb_ref, wp_ref, bp_ref, wt_ref,
                      h_ref, logits_ref,
                      *, num_heads, head_dim, eps):
    """grid = (batch_block, layer). The residual stream is resident in h_ref
    (the first output block) across the 'arbitrary' layer axis; the predictor
    runs in the last layer step and writes the second (lane-dense) output."""
    layer = pl.program_id(1)

    @pl.when(layer == 0)
    def _():
        h_ref[...] = x0_ref[...]

    x = h_ref[...]                         # (n_b, H) f32 residual stream
    n, hidden = x.shape

    # ---- fused QKV projection: one (n_b, H) @ (H, 3H) bf16 matmul, f32 acc ----
    qkv = jnp.dot(x.astype(BF16), wqkv_ref[0],
                  preferred_element_type=jnp.float32) + bqkv_ref[0]

    # head split done ONCE -> (nH, n_b, D); then a single head-batched score dot,
    # single softmax, single head-batched context dot.
    def heads(a):
        return jnp.stack([a[:, h * head_dim:(h + 1) * head_dim]
                          for h in range(num_heads)], axis=0).astype(BF16)

    qh = heads(qkv[:, 0:hidden])           # scale already folded into Wq/bq
    kh = heads(qkv[:, hidden:2 * hidden])
    vh = heads(qkv[:, 2 * hidden:3 * hidden])

    s = jnp.einsum('hqd,hkd->hqk', qh, kh,
                   preferred_element_type=jnp.float32)        # (nH, n_b, n_b) f32
    s = s + bias_ref[0]                    # rel-pos + causal + key-pad + seq-block mask
    m = jnp.max(s, axis=-1, keepdims=True)
    p = jnp.exp(s - m)
    p = p / jnp.sum(p, axis=-1, keepdims=True)                # exact divide (f32)
    ctx = jnp.einsum('hqk,hkd->hqd', p.astype(BF16), vh,
                     preferred_element_type=jnp.float32)      # (nH, n_b, D) f32
    ctx_cat = jnp.concatenate([ctx[h] for h in range(num_heads)], axis=-1)  # (n_b, H)

    # ---- ONE full-width output projection (K = HIDDEN = 256) ----
    attn = jnp.dot(ctx_cat.astype(BF16), wo_ref[0],
                   preferred_element_type=jnp.float32) + bo_ref[0]

    # ---- post-LN residual + GELU FFN (LN / residual math in f32) ----
    y = _layer_norm(x + attn, ln1g_ref[0], ln1b_ref[0], eps)
    h1 = jnp.dot(y.astype(BF16), w1_ref[0],
                 preferred_element_type=jnp.float32) + b1_ref[0]
    # TODO(synk): PyTorch 'gelu' activation is erf-exact; tanh approximation used here.
    h1 = jax.nn.gelu(h1, approximate=True)
    ff = jnp.dot(h1.astype(BF16), w2_ref[0],
                 preferred_element_type=jnp.float32) + b2_ref[0]
    y2 = _layer_norm(y + ff, ln2g_ref[0], ln2b_ref[0], eps)

    h_ref[...] = y2                        # residual accumulator lives in the output block

    # ---- fused predictor on the last layer step (hidden never leaves VMEM) ----
    @pl.when(layer == pl.num_programs(1) - 1)
    def _():
        yp = _layer_norm(y2, plg_ref[...], plb_ref[...], eps)
        proj = jnp.dot(yp.astype(BF16), wp_ref[...],
                       preferred_element_type=jnp.float32) + bp_ref[...]
        logits_ref[...] = jnp.dot(proj.astype(BF16), wt_ref[...],
                                  preferred_element_type=jnp.float32)


def fused_gpt(x0, attn_bias, stacked, pred, *, batch_blocks, rows_per_block):
    """Whole decoder stack + predictor in ONE pallas_call."""
    n, hidden = x0.shape
    num_layers = stacked['Wqkv'].shape[0]
    dim_ffn = stacked['W1'].shape[-1]
    nb = rows_per_block

    wmap = lambda b, l: (l, 0, 0)          # per-layer weight streaming
    cmap = lambda b, l: (0, 0)             # constant (predictor) weights
    bmap = lambda b, l: (b, 0)             # per-batch-block activations / outputs

    flops_layer = (2 * nb * hidden * 3 * hidden
                   + 2 * 2 * NUM_HEADS * nb * nb * HEAD_DIM
                   + 2 * nb * hidden * hidden
                   + 4 * nb * hidden * dim_ffn)
    flops_pred = 2 * nb * hidden * PRED_PROJ_PAD + 2 * nb * PRED_PROJ_PAD * PRED_OUT_PAD
    weight_bytes = sum(int(a.size) * a.dtype.itemsize for a in stacked.values())
    pred_bytes = sum(int(a.size) * a.dtype.itemsize for a in pred.values())
    cost = pl.CostEstimate(
        flops=int(batch_blocks * (num_layers * flops_layer + flops_pred)),
        transcendentals=int(batch_blocks * num_layers * (NUM_HEADS * nb * nb + nb * dim_ffn)),
        bytes_accessed=int(batch_blocks * weight_bytes + pred_bytes
                           + int(x0.size) * 4 + int(attn_bias.size) * 4
                           + n * hidden * 4 + n * PRED_OUT_PAD * 4))

    kern = functools.partial(_gpt_stack_kernel, num_heads=NUM_HEADS,
                             head_dim=HEAD_DIM, eps=LN_EPS)
    return pl.pallas_call(
        kern,
        out_shape=(jax.ShapeDtypeStruct((n, hidden), F32),
                   jax.ShapeDtypeStruct((n, PRED_OUT_PAD), F32)),
        grid=(batch_blocks, num_layers),
        in_specs=[
            pl.BlockSpec((nb, hidden), bmap),                            # x0
            pl.BlockSpec((1, NUM_HEADS, nb, nb), lambda b, l: (b, 0, 0, 0)),  # bias
            pl.BlockSpec((1, hidden, 3 * hidden), wmap),                 # Wqkv (bf16)
            pl.BlockSpec((1, 1, 3 * hidden), wmap),                      # bqkv
            pl.BlockSpec((1, hidden, hidden), wmap),                     # Wo   (bf16)
            pl.BlockSpec((1, 1, hidden), wmap),                          # bo
            pl.BlockSpec((1, 1, hidden), wmap),                          # ln1_g
            pl.BlockSpec((1, 1, hidden), wmap),                          # ln1_b
            pl.BlockSpec((1, hidden, dim_ffn), wmap),                    # W1   (bf16)
            pl.BlockSpec((1, 1, dim_ffn), wmap),                         # b1
            pl.BlockSpec((1, dim_ffn, hidden), wmap),                    # W2   (bf16)
            pl.BlockSpec((1, 1, hidden), wmap),                          # b2
            pl.BlockSpec((1, 1, hidden), wmap),                          # ln2_g
            pl.BlockSpec((1, 1, hidden), wmap),                          # ln2_b
            pl.BlockSpec((1, hidden), cmap),                             # pred ln_g
            pl.BlockSpec((1, hidden), cmap),                             # pred ln_b
            pl.BlockSpec((hidden, PRED_PROJ_PAD), cmap),                 # Wp   (bf16)
            pl.BlockSpec((1, PRED_PROJ_PAD), cmap),                      # bp
            pl.BlockSpec((PRED_PROJ_PAD, PRED_OUT_PAD), cmap),           # Wt   (bf16)
        ],
        out_specs=(pl.BlockSpec((nb, hidden), bmap),
                   pl.BlockSpec((nb, PRED_OUT_PAD), bmap)),
        compiler_params=pltpu.CompilerParams(
            dimension_semantics=("parallel", "arbitrary"),
            vmem_limit_bytes=32 * 1024 * 1024),
        cost_estimate=cost,
    )(x0.astype(F32), attn_bias.astype(F32),
      stacked['Wqkv'], stacked['bqkv'], stacked['Wo'], stacked['bo'],
      stacked['ln1_g'], stacked['ln1_b'],
      stacked['W1'], stacked['b1'], stacked['W2'], stacked['b2'],
      stacked['ln2_g'], stacked['ln2_b'],
      pred['ln_g'], pred['ln_b'], pred['Wp'], pred['bp'], pred['Wt'])


# =======================  weight preparation (JAX)  =======================

def init_params(key):
    def nrm(k, shape):
        return 0.02 * jax.random.normal(k, shape, F32)

    keys = iter(jax.random.split(key, 128))
    p = {}
    p['stem_embedding'] = nrm(next(keys), (TOT_STEMS, STEM_DIM)).at[0].set(0.0)   # padding_idx=0
    p['morpho_stem_emb'] = nrm(next(keys), (TOT_STEMS, MORPHO_DIM))
    p['pos_tag_emb'] = nrm(next(keys), (TOT_POS, MORPHO_DIM))
    p['afset_emb'] = nrm(next(keys), (TOT_AFSETS, MORPHO_DIM))
    p['affix_emb'] = nrm(next(keys), (TOT_AFFIXES, MORPHO_DIM)).at[0].set(0.0)
    p['rel_pos_table'] = nrm(next(keys), (REL_POS_BINS, NUM_HEADS))

    layers = []
    for _ in range(NUM_LAYERS):
        lp = dict(
            Wq=nrm(next(keys), (HIDDEN, HIDDEN)), bq=jnp.zeros((HIDDEN,), F32),
            Wk=nrm(next(keys), (HIDDEN, HIDDEN)), bk=jnp.zeros((HIDDEN,), F32),
            Wv=nrm(next(keys), (HIDDEN, HIDDEN)), bv=jnp.zeros((HIDDEN,), F32),
            Wo=nrm(next(keys), (HIDDEN, HIDDEN)), bo=jnp.zeros((HIDDEN,), F32),
            ln1_g=jnp.ones((HIDDEN,), F32), ln1_b=jnp.zeros((HIDDEN,), F32),
            ln2_g=jnp.ones((HIDDEN,), F32), ln2_b=jnp.zeros((HIDDEN,), F32),
            W1=nrm(next(keys), (HIDDEN, DIM_FFN)), b1=jnp.zeros((DIM_FFN,), F32),
            W2=nrm(next(keys), (DIM_FFN, HIDDEN)), b2=jnp.zeros((HIDDEN,), F32),
        )
        layers.append(lp)
    p['layers'] = layers

    p['pred_ln_g'] = jnp.ones((HIDDEN,), F32)
    p['pred_ln_b'] = jnp.zeros((HIDDEN,), F32)
    p['W_stem_proj'] = nrm(next(keys), (HIDDEN, STEM_DIM))
    p['b_stem_proj'] = jnp.zeros((STEM_DIM,), F32)
    p['W_pos_proj'] = nrm(next(keys), (HIDDEN, MORPHO_DIM))
    p['b_pos_proj'] = jnp.zeros((MORPHO_DIM,), F32)
    p['W_afset_proj'] = nrm(next(keys), (HIDDEN, MORPHO_DIM))
    p['b_afset_proj'] = jnp.zeros((MORPHO_DIM,), F32)
    p['W_affix_proj'] = nrm(next(keys), (HIDDEN, MORPHO_DIM))
    p['b_affix_proj'] = jnp.zeros((MORPHO_DIM,), F32)
    return p


def stack_layer_params(layers):
    """Stack per-layer weights; fold 1/sqrt(head_dim) into Wq/bq; matmul weights -> bf16."""
    scale = 1.0 / math.sqrt(HEAD_DIM)

    def st(f, dtype=None):
        a = jnp.stack([f(lp) for lp in layers])
        return a.astype(dtype) if dtype is not None else a

    return dict(
        Wqkv=st(lambda lp: jnp.concatenate([lp['Wq'] * scale, lp['Wk'], lp['Wv']], axis=1), BF16),
        bqkv=st(lambda lp: jnp.concatenate([lp['bq'] * scale, lp['bk'], lp['bv']])[None, :]),
        Wo=st(lambda lp: lp['Wo'], BF16),
        bo=st(lambda lp: lp['bo'][None, :]),
        ln1_g=st(lambda lp: lp['ln1_g'][None, :]),
        ln1_b=st(lambda lp: lp['ln1_b'][None, :]),
        W1=st(lambda lp: lp['W1'], BF16),
        b1=st(lambda lp: lp['b1'][None, :]),
        W2=st(lambda lp: lp['W2'], BF16),
        b2=st(lambda lp: lp['b2'][None, :]),
        ln2_g=st(lambda lp: lp['ln2_g'][None, :]),
        ln2_b=st(lambda lp: lp['ln2_b'][None, :]),
    )


def build_predictor_weights(params):
    """Concatenated head projections + block-diagonal tied-embedding logits,
    zero-padded to lane-dense widths (224 -> 256, 152 -> 256)."""
    wp = jnp.concatenate([params['W_stem_proj'], params['W_pos_proj'],
                          params['W_afset_proj'], params['W_affix_proj']], axis=1)
    bp = jnp.concatenate([params['b_stem_proj'], params['b_pos_proj'],
                          params['b_afset_proj'], params['b_affix_proj']])
    c0 = TOT_STEMS
    c1 = c0 + TOT_POS
    c2 = c1 + TOT_AFSETS
    wt = jnp.zeros((PRED_PROJ, PRED_OUT), F32)
    wt = wt.at[0:STEM_DIM, 0:c0].set(params['stem_embedding'].T)
    wt = wt.at[STEM_DIM:STEM_DIM + MORPHO_DIM, c0:c1].set(params['pos_tag_emb'].T)
    wt = wt.at[STEM_DIM + MORPHO_DIM:STEM_DIM + 2 * MORPHO_DIM, c1:c2].set(params['afset_emb'].T)
    wt = wt.at[STEM_DIM + 2 * MORPHO_DIM:PRED_PROJ, c2:PRED_OUT].set(params['affix_emb'].T)

    wp_pad = jnp.zeros((HIDDEN, PRED_PROJ_PAD), F32).at[:, :PRED_PROJ].set(wp).astype(BF16)
    bp_pad = jnp.zeros((1, PRED_PROJ_PAD), F32).at[0, :PRED_PROJ].set(bp)
    wt_pad = jnp.zeros((PRED_PROJ_PAD, PRED_OUT_PAD), F32).at[:PRED_PROJ, :PRED_OUT].set(wt).astype(BF16)
    return dict(ln_g=params['pred_ln_g'].reshape(1, HIDDEN),
                ln_b=params['pred_ln_b'].reshape(1, HIDDEN),
                Wp=wp_pad, bp=bp_pad, Wt=wt_pad)


# =======================  model forward (JAX glue + kernel)  =======================

def _morpho_x0(params, lm_morphs, pos_tags, stems, afx_padded, m_masks_padded):
    # --- MorphoEncoder (simplified: embeddings + masked-mean affix pooling) ---
    # TODO(synk): original MorphoEncoder runs a small transformer over morphemes.
    stem_m = params['morpho_stem_emb'][stems]
    pos_m = params['pos_tag_emb'][pos_tags]
    afset_m = params['afset_emb'][lm_morphs]
    afx_e = params['affix_emb'][afx_padded]                        # (max_n, L, md)
    valid = (~m_masks_padded).astype(F32).T                        # (max_n, L)
    cnt = jnp.maximum(valid.sum(0), 1.0)
    afx_m = (afx_e * valid[:, :, None]).sum(0) / cnt[:, None]
    stem_input = params['stem_embedding'][stems]                   # (L, stem_dim)
    return jnp.concatenate([stem_m, pos_m, afset_m, afx_m, stem_input], axis=-1)


def _build_attn_bias(params, decoder_mask, input_masks_padded, batch_blocks, bsl, S):
    # PositionEncoding: relative position bias per head + causal + key-padding,
    # assembled block-diagonally per batch block (cross-sequence pairs masked).
    pos = jnp.arange(S)
    rel = pos[:, None] - pos[None, :]
    buckets = jnp.clip(rel + MAX_REL_POS, 0, REL_POS_BINS - 1)
    abs_pos_bias = jnp.transpose(params['rel_pos_table'][buckets], (2, 0, 1))  # (nH,S,S)
    kpm_add = jnp.where(input_masks_padded, NEG_INF, 0.0).astype(F32)          # (B,S)
    bias_seq = (abs_pos_bias[None, :, :, :]
                + decoder_mask[None, None, :, :].astype(F32)
                + kpm_add[:, None, None, :])                                   # (B,nH,S,S)
    bias_seq = bias_seq.reshape(batch_blocks, bsl, NUM_HEADS, S, S)
    nb = bsl * S
    # TODO(synk): at large S this bias should be regenerated inside the kernel from the
    #             tiny rel-pos table + pad mask instead of materializing (B,nH,nb,nb).
    big = jnp.full((batch_blocks, NUM_HEADS, nb, nb), NEG_INF, F32)
    for i in range(bsl):
        big = big.at[:, :, i * S:(i + 1) * S, i * S:(i + 1) * S].set(bias_seq[:, i])
    return big


@functools.partial(jax.jit, static_argnums=(5,))
def mygpt_forward(params, lm_morphs, pos_tags, tokens_lengths, stems,
                  input_sequence_lengths, affixes_prob, afx_padded, m_masks_padded,
                  input_masks_padded, decoder_mask):
    B = len(input_sequence_lengths)
    S = input_sequence_lengths[0]
    assert all(l == S for l in input_sequence_lengths), "equal-length sequences assumed"

    # batch-parallel grid axis (used by v7x's second TensorCore; cheap elsewhere)
    batch_blocks = 2 if (B % 2 == 0 and ((B // 2) * S) % 8 == 0) else 1
    bsl = B // batch_blocks
    n_b = bsl * S
    assert n_b % 8 == 0, "rows per batch block must be sublane-aligned"

    x0 = _morpho_x0(params, lm_morphs, pos_tags, stems, afx_padded, m_masks_padded)
    attn_bias = _build_attn_bias(params, decoder_mask, input_masks_padded,
                                 batch_blocks, bsl, S)
    stacked = stack_layer_params(params['layers'])
    pred = build_predictor_weights(params)

    # single fused pallas_call: all decoder layers + predictor
    _hidden, logits_pad = fused_gpt(x0.astype(F32), attn_bias, stacked, pred,
                                    batch_blocks=batch_blocks, rows_per_block=n_b)

    # next-token prediction: hidden at position i predicts token i+1 (per sequence)
    logits = logits_pad.reshape(B, S, PRED_OUT_PAD)[:, :S - 1, :PRED_OUT]
    n_src = B * (S - 1)
    logits = logits.reshape(n_src, PRED_OUT)
    c0 = TOT_STEMS
    c1 = c0 + TOT_POS
    c2 = c1 + TOT_AFSETS
    stem_logits = logits[:, :c0]
    pos_logits = logits[:, c0:c1]
    afset_logits = logits[:, c1:c2]
    affix_logits = logits[:, c2:]

    stems_t = stems.reshape(B, S)[:, 1:].reshape(-1)
    pos_t = pos_tags.reshape(B, S)[:, 1:].reshape(-1)
    afset_t = lm_morphs.reshape(B, S)[:, 1:].reshape(-1)
    afx_t = affixes_prob.reshape(B, S, -1)[:, 1:, :].reshape(n_src, -1)

    def nll(lg, tg):
        logp = jax.nn.log_softmax(lg, axis=-1)
        return -jnp.mean(jnp.take_along_axis(logp, tg[:, None], axis=-1))

    stem_nll = nll(stem_logits, stems_t)
    pos_nll = nll(pos_logits, pos_t)
    afset_nll = nll(afset_logits, afset_t)
    # multi-hot affix targets -> BCE-with-logits
    # TODO(synk): exact MorphoGPTPredictor affix loss / label smoothing not available.
    affix_nll = jnp.mean(jnp.maximum(affix_logits, 0.0) - affix_logits * afx_t
                         + jnp.log1p(jnp.exp(-jnp.abs(affix_logits))))

    losses = jnp.stack([stem_nll, pos_nll, afset_nll, affix_nll])
    nll_losses = losses
    return losses, nll_losses


# =======================  main  =======================

if __name__ == "__main__":
    B, S = 2, 8
    L = B * S
    MAX_AFX = 4

    key = jax.random.PRNGKey(0)
    key, pkey, k0, k1, k2, k3, k4 = jax.random.split(key, 7)
    params = init_params(pkey)

    stems = jax.random.randint(k0, (L,), 1, TOT_STEMS)
    pos_tags = jax.random.randint(k1, (L,), 1, TOT_POS)
    lm_morphs = jax.random.randint(k2, (L,), 1, TOT_AFSETS)
    tokens_lengths = jax.random.randint(k3, (L,), 0, MAX_AFX + 1)          # affixes per token
    afx_ids = jax.random.randint(k4, (MAX_AFX, L), 1, TOT_AFFIXES)

    slot = jnp.arange(MAX_AFX)[:, None]
    valid = slot < tokens_lengths[None, :]                                  # (MAX_AFX, L)
    afx_padded = jnp.where(valid, afx_ids, 0)                               # (MAX_AFX, L)
    m_masks_padded = ~valid.T                                               # (L, MAX_AFX) True = pad

    onehots = jax.nn.one_hot(afx_padded.T, TOT_AFFIXES) * valid.T[:, :, None].astype(F32)
    affixes_prob = jnp.clip(onehots.sum(1), 0.0, 1.0)                       # (L, TOT_AFFIXES)

    input_sequence_lengths = (S,) * B                                       # static (equal lengths)
    input_masks_padded = jnp.zeros((B, S), bool).at[:, -1].set(True)        # EOS key-padded

    # generate_square_subsequent_mask equivalent (additive causal mask, finite -1e9)
    row = jnp.arange(S)
    decoder_mask = jnp.where(row[None, :] <= row[:, None], 0.0, NEG_INF).astype(F32)

    losses, nll_losses = mygpt_forward(
        params, lm_morphs, pos_tags, tokens_lengths, stems, input_sequence_lengths,
        affixes_prob, afx_padded, m_masks_padded, input_masks_padded, decoder_mask)

    jax.block_until_ready((losses, nll_losses))
    print("KERNEL_OK")
</pallas_src>

<mosaic_0001>
module attributes {stable_mosaic.version = 11 : i64} {
  func.func @_gpt_stack_kernel(%arg0: i32, %arg1: i32, %arg2: memref<8x256xf32, #tpu.memory_space<vmem>>, %arg3: memref<1x4x8x8xf32, #tpu.memory_space<vmem>>, %arg4: memref<1x256x768xbf16, #tpu.memory_space<vmem>>, %arg5: memref<1x1x768xf32, #tpu.memory_space<vmem>>, %arg6: memref<1x256x256xbf16, #tpu.memory_space<vmem>>, %arg7: memref<1x1x256xf32, #tpu.memory_space<vmem>>, %arg8: memref<1x1x256xf32, #tpu.memory_space<vmem>>, %arg9: memref<1x1x256xf32, #tpu.memory_space<vmem>>, %arg10: memref<1x256x512xbf16, #tpu.memory_space<vmem>>, %arg11: memref<1x1x512xf32, #tpu.memory_space<vmem>>, %arg12: memref<1x512x256xbf16, #tpu.memory_space<vmem>>, %arg13: memref<1x1x256xf32, #tpu.memory_space<vmem>>, %arg14: memref<1x1x256xf32, #tpu.memory_space<vmem>>, %arg15: memref<1x1x256xf32, #tpu.memory_space<vmem>>, %arg16: memref<1x256xf32, #tpu.memory_space<vmem>>, %arg17: memref<1x256xf32, #tpu.memory_space<vmem>>, %arg18: memref<256x256xbf16, #tpu.memory_space<vmem>>, %arg19: memref<1x256xf32, #tpu.memory_space<vmem>>, %arg20: memref<256x256xbf16, #tpu.memory_space<vmem>>, %arg21: memref<8x256xf32, #tpu.memory_space<vmem>>, %arg22: memref<8x256xf32, #tpu.memory_space<vmem>>) attributes {dimension_semantics = [#tpu.dimension_semantics<parallel>, #tpu.dimension_semantics<arbitrary>], iteration_bounds = array<i64: 2, 2>, scalar_prefetch = 0 : i64, scratch_operands = 0 : i64, tpu.core_type = #tpu.core_type<tc>, window_params = [{transform_indices = @transform_0, window_bounds = array<i64: 8, 256>}, {transform_indices = @transform_1, window_bounds = array<i64: 1, 4, 8, 8>}, {transform_indices = @transform_2, window_bounds = array<i64: 1, 256, 768>}, {transform_indices = @transform_3, window_bounds = array<i64: 1, 1, 768>}, {transform_indices = @transform_4, window_bounds = array<i64: 1, 256, 256>}, {transform_indices = @transform_5, window_bounds = array<i64: 1, 1, 256>}, {transform_indices = @transform_6, window_bounds = array<i64: 1, 1, 256>}, {transform_indices = @transform_7, window_bounds = array<i64: 1, 1, 256>}, {transform_indices = @transform_8, window_bounds = array<i64: 1, 256, 512>}, {transform_indices = @transform_9, window_bounds = array<i64: 1, 1, 512>}, {transform_indices = @transform_10, window_bounds = array<i64: 1, 512, 256>}, {transform_indices = @transform_11, window_bounds = array<i64: 1, 1, 256>}, {transform_indices = @transform_12, window_bounds = array<i64: 1, 1, 256>}, {transform_indices = @transform_13, window_bounds = array<i64: 1, 1, 256>}, {pipeline_mode = #tpu.pipeline_mode<synchronous>, transform_indices = @transform_14, window_bounds = array<i64: 1, 256>}, {pipeline_mode = #tpu.pipeline_mode<synchronous>, transform_indices = @transform_15, window_bounds = array<i64: 1, 256>}, {pipeline_mode = #tpu.pipeline_mode<synchronous>, transform_indices = @transform_16, window_bounds = array<i64: 256, 256>}, {pipeline_mode = #tpu.pipeline_mode<synchronous>, transform_indices = @transform_17, window_bounds = array<i64: 1, 256>}, {pipeline_mode = #tpu.pipeline_mode<synchronous>, transform_indices = @transform_18, window_bounds = array<i64: 256, 256>}, {transform_indices = @transform_19, window_bounds = array<i64: 8, 256>}, {transform_indices = @transform_20, window_bounds = array<i64: 8, 256>}]} {
    %c0_i32 = arith.constant 0 : i32
    %0 = arith.cmpi eq, %arg1, %c0_i32 : i32
    %1 = arith.extui %0 : i1 to i32
    %c0_i32_0 = arith.constant 0 : i32
    %2 = arith.cmpi ne, %1, %c0_i32_0 : i32
    scf.if %2 {
      %c0_66 = arith.constant 0 : index
      %c0_67 = arith.constant 0 : index
      %160 = vector.load %arg2[%c0_66, %c0_67] : memref<8x256xf32, #tpu.memory_space<vmem>>, vector<8x256xf32>
      %c0_68 = arith.constant 0 : index
      %c0_69 = arith.constant 0 : index
      %161 = vector.load %arg21[%c0_68, %c0_69] : memref<8x256xf32, #tpu.memory_space<vmem>>, vector<8x256xf32>
      tpu.vector_store %arg21[%c0_68, %c0_69], %160 {strides = array<i32>} : memref<8x256xf32, #tpu.memory_space<vmem>>, vector<8x256xf32>,
    } else {
    }
    %c0 = arith.constant 0 : index
    %c0_1 = arith.constant 0 : index
    %3 = vector.load %arg21[%c0, %c0_1] : memref<8x256xf32, #tpu.memory_space<vmem>>, vector<8x256xf32>
    %4 = arith.truncf %3 : vector<8x256xf32> to vector<8x256xbf16>
    %c0_2 = arith.constant 0 : index
    %c0_3 = arith.constant 0 : index
    %c0_4 = arith.constant 0 : index
    %5 = vector.load %arg4[%c0_2, %c0_3, %c0_4] : memref<1x256x768xbf16, #tpu.memory_space<vmem>>, vector<1x256x768xbf16>
    %6 = vector.shape_cast %5 : vector<1x256x768xbf16> to vector<256x768xbf16>
    %cst = arith.constant dense<0.000000e+00> : vector<8x768xf32>
    %7 = tpu.matmul %4, %6, %cst {dimension_numbers = #tpu.dot_dimension_numbers<[1], [0], [0], [1], [0, 0, 1, 1], [], []>} : vector<8x256xbf16>, vector<256x768xbf16>, vector<8x768xf32> -> vector<8x768xf32>
    %c0_5 = arith.constant 0 : index
    %c0_6 = arith.constant 0 : index
    %c0_7 = arith.constant 0 : index
    %8 = vector.load %arg5[%c0_5, %c0_6, %c0_7] : memref<1x1x768xf32, #tpu.memory_space<vmem>>, vector<1x1x768xf32>
    %9 = vector.shape_cast %8 : vector<1x1x768xf32> to vector<1x768xf32>
    %10 = vector.broadcast %9 : vector<1x768xf32> to vector<8x768xf32>
    %11 = arith.addf %7, %10 : vector<8x768xf32>
    %12 = vector.extract_strided_slice %11 {offsets = [0, 0], sizes = [8, 256], strides = [1, 1]} : vector<8x768xf32> to vector<8x256xf32>
    %13 = vector.extract_strided_slice %12 {offsets = [0, 0], sizes = [8, 64], strides = [1, 1]} : vector<8x256xf32> to vector<8x64xf32>
    %14 = vector.extract_strided_slice %12 {offsets = [0, 64], sizes = [8, 64], strides = [1, 1]} : vector<8x256xf32> to vector<8x64xf32>
    %15 = vector.extract_strided_slice %12 {offsets = [0, 128], sizes = [8, 64], strides = [1, 1]} : vector<8x256xf32> to vector<8x64xf32>
    %16 = vector.extract_strided_slice %12 {offsets = [0, 192], sizes = [8, 64], strides = [1, 1]} : vector<8x256xf32> to vector<8x64xf32>
    %17 = vector.shape_cast %13 : vector<8x64xf32> to vector<1x8x64xf32>
    %18 = vector.shape_cast %14 : vector<8x64xf32> to vector<1x8x64xf32>
    %19 = vector.shape_cast %15 : vector<8x64xf32> to vector<1x8x64xf32>
    %20 = vector.shape_cast %16 : vector<8x64xf32> to vector<1x8x64xf32>
    %21 = tpu.concatenate %17, %18, %19, %20 in 0 : vector<1x8x64xf32>, vector<1x8x64xf32>, vector<1x8x64xf32>, vector<1x8x64xf32> -> vector<4x8x64xf32>
    %22 = arith.truncf %21 : vector<4x8x64xf32> to vector<4x8x64xbf16>
    %23 = vector.extract_strided_slice %11 {offsets = [0, 256], sizes = [8, 256], strides = [1, 1]} : vector<8x768xf32> to vector<8x256xf32>
    %24 = vector.extract_strided_slice %23 {offsets = [0, 0], sizes = [8, 64], strides = [1, 1]} : vector<8x256xf32> to vector<8x64xf32>
    %25 = vector.extract_strided_slice %23 {offsets = [0, 64], sizes = [8, 64], strides = [1, 1]} : vector<8x256xf32> to vector<8x64xf32>
    %26 = vector.extract_strided_slice %23 {offsets = [0, 128], sizes = [8, 64], strides = [1, 1]} : vector<8x256xf32> to vector<8x64xf32>
    %27 = vector.extract_strided_slice %23 {offsets = [0, 192], sizes = [8, 64], strides = [1, 1]} : vector<8x256xf32> to vector<8x64xf32>
    %28 = vector.shape_cast %24 : vector<8x64xf32> to vector<1x8x64xf32>
    %29 = vector.shape_cast %25 : vector<8x64xf32> to vector<1x8x64xf32>
    %30 = vector.shape_cast %26 : vector<8x64xf32> to vector<1x8x64xf32>
    %31 = vector.shape_cast %27 : vector<8x64xf32> to vector<1x8x64xf32>
    %32 = tpu.concatenate %28, %29, %30, %31 in 0 : vector<1x8x64xf32>, vector<1x8x64xf32>, vector<1x8x64xf32>, vector<1x8x64xf32> -> vector<4x8x64xf32>
    %33 = arith.truncf %32 : vector<4x8x64xf32> to vector<4x8x64xbf16>
    %34 = vector.extract_strided_slice %11 {offsets = [0, 512], sizes = [8, 256], strides = [1, 1]} : vector<8x768xf32> to vector<8x256xf32>
    %35 = vector.extract_strided_slice %34 {offsets = [0, 0], sizes = [8, 64], strides = [1, 1]} : vector<8x256xf32> to vector<8x64xf32>
    %36 = vector.extract_strided_slice %34 {offsets = [0, 64], sizes = [8, 64], strides = [1, 1]} : vector<8x256xf32> to vector<8x64xf32>
    %37 = vector.extract_strided_slice %34 {offsets = [0, 128], sizes = [8, 64], strides = [1, 1]} : vector<8x256xf32> to vector<8x64xf32>
    %38 = vector.extract_strided_slice %34 {offsets = [0, 192], sizes = [8, 64], strides = [1, 1]} : vector<8x256xf32> to vector<8x64xf32>
    %39 = vector.shape_cast %35 : vector<8x64xf32> to vector<1x8x64xf32>
    %40 = vector.shape_cast %36 : vector<8x64xf32> to vector<1x8x64xf32>
    %41 = vector.shape_cast %37 : vector<8x64xf32> to vector<1x8x64xf32>
    %42 = vector.shape_cast %38 : vector<8x64xf32> to vector<1x8x64xf32>
    %43 = tpu.concatenate %39, %40, %41, %42 in 0 : vector<1x8x64xf32>, vector<1x8x64xf32>, vector<1x8x64xf32>, vector<1x8x64xf32> -> vector<4x8x64xf32>
    %44 = arith.truncf %43 : vector<4x8x64xf32> to vector<4x8x64xbf16>
    "tpu.trace_start"() <{level = 10 : i32, message = "hqd,hkd->hqk"}> : () -> ()
    %cst_8 = arith.constant dense<0.000000e+00> : vector<4x8x8xf32>
    %45 = tpu.matmul %22, %33, %cst_8 {dimension_numbers = #tpu.dot_dimension_numbers<[2], [2], [1], [1], [0, 0, 0, 1, 1, 1], [0], [0]>} : vector<4x8x64xbf16>, vector<4x8x64xbf16>, vector<4x8x8xf32> -> vector<4x8x8xf32>
    "tpu.trace_stop"() : () -> ()
    %c0_9 = arith.constant 0 : index
    %c0_10 = arith.constant 0 : index
    %c0_11 = arith.constant 0 : index
    %c0_12 = arith.constant 0 : index
    %46 = vector.load %arg3[%c0_9, %c0_10, %c0_11, %c0_12] : memref<1x4x8x8xf32, #tpu.memory_space<vmem>>, vector<1x4x8x8xf32>
    %47 = vector.shape_cast %46 : vector<1x4x8x8xf32> to vector<4x8x8xf32>
    %48 = arith.addf %45, %47 : vector<4x8x8xf32>
    %cst_13 = arith.constant dense<0xFF800000> : vector<4x8xf32>
    %49 = vector.multi_reduction <maximumf>, %48, %cst_13 [2] : vector<4x8x8xf32> to vector<4x8xf32>
    %50 = vector.shape_cast %49 : vector<4x8xf32> to vector<4x8x1xf32>
    %51 = vector.broadcast %50 : vector<4x8x1xf32> to vector<4x8x8xf32>
    %52 = arith.subf %48, %51 : vector<4x8x8xf32>
    %53 = math.exp %52 : vector<4x8x8xf32>
    %cst_14 = arith.constant dense<0.000000e+00> : vector<4x8xf32>
    %54 = vector.multi_reduction <add>, %53, %cst_14 [2] : vector<4x8x8xf32> to vector<4x8xf32>
    %55 = vector.shape_cast %54 : vector<4x8xf32> to vector<4x8x1xf32>
    %56 = vector.broadcast %55 : vector<4x8x1xf32> to vector<4x8x8xf32>
    %57 = arith.divf %53, %56 : vector<4x8x8xf32>
    %58 = arith.truncf %57 : vector<4x8x8xf32> to vector<4x8x8xbf16>
    "tpu.trace_start"() <{level = 10 : i32, message = "hqk,hkd->hqd"}> : () -> ()
    %cst_15 = arith.constant dense<0.000000e+00> : vector<4x8x64xf32>
    %59 = tpu.matmul %58, %44, %cst_15 {dimension_numbers = #tpu.dot_dimension_numbers<[2], [1], [1], [2], [0, 0, 0, 1, 1, 2], [0], [0]>} : vector<4x8x8xbf16>, vector<4x8x64xbf16>, vector<4x8x64xf32> -> vector<4x8x64xf32>
    "tpu.trace_stop"() : () -> ()
    %60 = vector.extract_strided_slice %59 {offsets = [0, 0, 0], sizes = [1, 8, 64], strides = [1, 1, 1]} : vector<4x8x64xf32> to vector<1x8x64xf32>
    %61 = vector.shape_cast %60 : vector<1x8x64xf32> to vector<8x64xf32>
    %62 = vector.extract_strided_slice %59 {offsets = [1, 0, 0], sizes = [1, 8, 64], strides = [1, 1, 1]} : vector<4x8x64xf32> to vector<1x8x64xf32>
    %63 = vector.shape_cast %62 : vector<1x8x64xf32> to vector<8x64xf32>
    %64 = vector.extract_strided_slice %59 {offsets = [2, 0, 0], sizes = [1, 8, 64], strides = [1, 1, 1]} : vector<4x8x64xf32> to vector<1x8x64xf32>
    %65 = vector.shape_cast %64 : vector<1x8x64xf32> to vector<8x64xf32>
    %66 = vector.extract_strided_slice %59 {offsets = [3, 0, 0], sizes = [1, 8, 64], strides = [1, 1, 1]} : vector<4x8x64xf32> to vector<1x8x64xf32>
    %67 = vector.shape_cast %66 : vector<1x8x64xf32> to vector<8x64xf32>
    %68 = tpu.concatenate %61, %63, %65, %67 in 1 : vector<8x64xf32>, vector<8x64xf32>, vector<8x64xf32>, vector<8x64xf32> -> vector<8x256xf32>
    %69 = arith.truncf %68 : vector<8x256xf32> to vector<8x256xbf16>
    %c0_16 = arith.constant 0 : index
    %c0_17 = arith.constant 0 : index
    %c0_18 = arith.constant 0 : index
    %70 = vector.load %arg6[%c0_16, %c0_17, %c0_18] : memref<1x256x256xbf16, #tpu.memory_space<vmem>>, vector<1x256x256xbf16>
    %71 = vector.shape_cast %70 : vector<1x256x256xbf16> to vector<256x256xbf16>
    %cst_19 = arith.constant dense<0.000000e+00> : vector<8x256xf32>
    %72 = tpu.matmul %69, %71, %cst_19 {dimension_numbers = #tpu.dot_dimension_numbers<[1], [0], [0], [1], [0, 0, 1, 1], [], []>} : vector<8x256xbf16>, vector<256x256xbf16>, vector<8x256xf32> -> vector<8x256xf32>
    %c0_20 = arith.constant 0 : index
    %c0_21 = arith.constant 0 : index
    %c0_22 = arith.constant 0 : index
    %73 = vector.load %arg7[%c0_20, %c0_21, %c0_22] : memref<1x1x256xf32, #tpu.memory_space<vmem>>, vector<1x1x256xf32>
    %74 = vector.shape_cast %73 : vector<1x1x256xf32> to vector<1x256xf32>
    %75 = vector.broadcast %74 : vector<1x256xf32> to vector<8x256xf32>
    %76 = arith.addf %72, %75 : vector<8x256xf32>
    %77 = arith.addf %3, %76 : vector<8x256xf32>
    %c0_23 = arith.constant 0 : index
    %c0_24 = arith.constant 0 : index
    %c0_25 = arith.constant 0 : index
    %78 = vector.load %arg8[%c0_23, %c0_24, %c0_25] : memref<1x1x256xf32, #tpu.memory_space<vmem>>, vector<1x1x256xf32>
    %79 = vector.shape_cast %78 : vector<1x1x256xf32> to vector<1x256xf32>
    %c0_26 = arith.constant 0 : index
    %c0_27 = arith.constant 0 : index
    %c0_28 = arith.constant 0 : index
    %80 = vector.load %arg9[%c0_26, %c0_27, %c0_28] : memref<1x1x256xf32, #tpu.memory_space<vmem>>, vector<1x1x256xf32>
    %81 = vector.shape_cast %80 : vector<1x1x256xf32> to vector<1x256xf32>
    %cst_29 = arith.constant dense<0.000000e+00> : vector<8xf32>
    %82 = vector.multi_reduction <add>, %77, %cst_29 [1] : vector<8x256xf32> to vector<8xf32>
    %83 = vector.shape_cast %82 : vector<8xf32> to vector<8x1xf32>
    %cst_30 = arith.constant 2.560000e+02 : f32
    %84 = vector.broadcast %cst_30 : f32 to vector<8x1xf32>
    %85 = arith.divf %83, %84 : vector<8x1xf32>
    %86 = vector.broadcast %85 : vector<8x1xf32> to vector<8x256xf32>
    %87 = arith.subf %77, %86 : vector<8x256xf32>
    %88 = arith.mulf %87, %87 : vector<8x256xf32>
    %cst_31 = arith.constant dense<0.000000e+00> : vector<8xf32>
    %89 = vector.multi_reduction <add>, %88, %cst_31 [1] : vector<8x256xf32> to vector<8xf32>
    %90 = vector.shape_cast %89 : vector<8xf32> to vector<8x1xf32>
    %cst_32 = arith.constant 2.560000e+02 : f32
    %91 = vector.broadcast %cst_32 : f32 to vector<8x1xf32>
    %92 = arith.divf %90, %91 : vector<8x1xf32>
    %cst_33 = arith.constant 9.99999997E-7 : f32
    %93 = vector.broadcast %cst_33 : f32 to vector<8x1xf32>
    %94 = arith.addf %92, %93 : vector<8x1xf32>
    %95 = math.rsqrt %94 : vector<8x1xf32>
    %96 = vector.broadcast %95 : vector<8x1xf32> to vector<8x256xf32>
    %97 = arith.mulf %87, %96 : vector<8x256xf32>
    %98 = vector.broadcast %79 : vector<1x256xf32> to vector<8x256xf32>
    %99 = arith.mulf %97, %98 : vector<8x256xf32>
    %100 = vector.broadcast %81 : vector<1x256xf32> to vector<8x256xf32>
    %101 = arith.addf %99, %100 : vector<8x256xf32>
    %102 = arith.truncf %101 : vector<8x256xf32> to vector<8x256xbf16>
    %c0_34 = arith.constant 0 : index
    %c0_35 = arith.constant 0 : index
    %c0_36 = arith.constant 0 : index
    %103 = vector.load %arg10[%c0_34, %c0_35, %c0_36] : memref<1x256x512xbf16, #tpu.memory_space<vmem>>, vector<1x256x512xbf16>
    %104 = vector.shape_cast %103 : vector<1x256x512xbf16> to vector<256x512xbf16>
    %cst_37 = arith.constant dense<0.000000e+00> : vector<8x512xf32>
    %105 = tpu.matmul %102, %104, %cst_37 {dimension_numbers = #tpu.dot_dimension_numbers<[1], [0], [0], [1], [0, 0, 1, 1], [], []>} : vector<8x256xbf16>, vector<256x512xbf16>, vector<8x512xf32> -> vector<8x512xf32>
    %c0_38 = arith.constant 0 : index
    %c0_39 = arith.constant 0 : index
    %c0_40 = arith.constant 0 : index
    %106 = vector.load %arg11[%c0_38, %c0_39, %c0_40] : memref<1x1x512xf32, #tpu.memory_space<vmem>>, vector<1x1x512xf32>
    %107 = vector.shape_cast %106 : vector<1x1x512xf32> to vector<1x512xf32>
    %108 = vector.broadcast %107 : vector<1x512xf32> to vector<8x512xf32>
    %109 = arith.addf %105, %108 : vector<8x512xf32>
    %110 = arith.mulf %109, %109 : vector<8x512xf32>
    %111 = arith.mulf %109, %110 : vector<8x512xf32>
    %cst_41 = arith.constant 4.471500e-02 : f32
    %112 = vector.broadcast %cst_41 : f32 to vector<8x512xf32>
    %113 = arith.mulf %112, %111 : vector<8x512xf32>
    %114 = arith.addf %109, %113 : vector<8x512xf32>
    %cst_42 = arith.constant 0.797884583 : f32
    %115 = vector.broadcast %cst_42 : f32 to vector<8x512xf32>
    %116 = arith.mulf %115, %114 : vector<8x512xf32>
    %117 = math.tanh %116 : vector<8x512xf32>
    %cst_43 = arith.constant 1.000000e+00 : f32
    %118 = vector.broadcast %cst_43 : f32 to vector<8x512xf32>
    %119 = arith.addf %118, %117 : vector<8x512xf32>
    %cst_44 = arith.constant 5.000000e-01 : f32
    %120 = vector.broadcast %cst_44 : f32 to vector<8x512xf32>
    %121 = arith.mulf %120, %119 : vector<8x512xf32>
    %122 = arith.mulf %109, %121 : vector<8x512xf32>
    %123 = arith.truncf %122 : vector<8x512xf32> to vector<8x512xbf16>
    %c0_45 = arith.constant 0 : index
    %c0_46 = arith.constant 0 : index
    %c0_47 = arith.constant 0 : index
    %124 = vector.load %arg12[%c0_45, %c0_46, %c0_47] : memref<1x512x256xbf16, #tpu.memory_space<vmem>>, vector<1x512x256xbf16>
    %125 = vector.shape_cast %124 : vector<1x512x256xbf16> to vector<512x256xbf16>
    %cst_48 = arith.constant dense<0.000000e+00> : vector<8x256xf32>
    %126 = tpu.matmul %123, %125, %cst_48 {dimension_numbers = #tpu.dot_dimension_numbers<[1], [0], [0], [1], [0, 0, 1, 1], [], []>} : vector<8x512xbf16>, vector<512x256xbf16>, vector<8x256xf32> -> vector<8x256xf32>
    %c0_49 = arith.constant 0 : index
    %c0_50 = arith.constant 0 : index
    %c0_51 = arith.constant 0 : index
    %127 = vector.load %arg13[%c0_49, %c0_50, %c0_51] : memref<1x1x256xf32, #tpu.memory_space<vmem>>, vector<1x1x256xf32>
    %128 = vector.shape_cast %127 : vector<1x1x256xf32> to vector<1x256xf32>
    %129 = vector.broadcast %128 : vector<1x256xf32> to vector<8x256xf32>
    %130 = arith.addf %126, %129 : vector<8x256xf32>
    %131 = arith.addf %101, %130 : vector<8x256xf32>
    %c0_52 = arith.constant 0 : index
    %c0_53 = arith.constant 0 : index
    %c0_54 = arith.constant 0 : index
    %132 = vector.load %arg14[%c0_52, %c0_53, %c0_54] : memref<1x1x256xf32, #tpu.memory_space<vmem>>, vector<1x1x256xf32>
    %133 = vector.shape_cast %132 : vector<1x1x256xf32> to vector<1x256xf32>
    %c0_55 = arith.constant 0 : index
    %c0_56 = arith.constant 0 : index
    %c0_57 = arith.constant 0 : index
    %134 = vector.load %arg15[%c0_55, %c0_56, %c0_57] : memref<1x1x256xf32, #tpu.memory_space<vmem>>, vector<1x1x256xf32>
    %135 = vector.shape_cast %134 : vector<1x1x256xf32> to vector<1x256xf32>
    %cst_58 = arith.constant dense<0.000000e+00> : vector<8xf32>
    %136 = vector.multi_reduction <add>, %131, %cst_58 [1] : vector<8x256xf32> to vector<8xf32>
    %137 = vector.shape_cast %136 : vector<8xf32> to vector<8x1xf32>
    %cst_59 = arith.constant 2.560000e+02 : f32
    %138 = vector.broadcast %cst_59 : f32 to vector<8x1xf32>
    %139 = arith.divf %137, %138 : vector<8x1xf32>
    %140 = vector.broadcast %139 : vector<8x1xf32> to vector<8x256xf32>
    %141 = arith.subf %131, %140 : vector<8x256xf32>
    %142 = arith.mulf %141, %141 : vector<8x256xf32>
    %cst_60 = arith.constant dense<0.000000e+00> : vector<8xf32>
    %143 = vector.multi_reduction <add>, %142, %cst_60 [1] : vector<8x256xf32> to vector<8xf32>
    %144 = vector.shape_cast %143 : vector<8xf32> to vector<8x1xf32>
    %cst_61 = arith.constant 2.560000e+02 : f32
    %145 = vector.broadcast %cst_61 : f32 to vector<8x1xf32>
    %146 = arith.divf %144, %145 : vector<8x1xf32>
    %cst_62 = arith.constant 9.99999997E-7 : f32
    %147 = vector.broadcast %cst_62 : f32 to vector<8x1xf32>
    %148 = arith.addf %146, %147 : vector<8x1xf32>
    %149 = math.rsqrt %148 : vector<8x1xf32>
    %150 = vector.broadcast %149 : vector<8x1xf32> to vector<8x256xf32>
    %151 = arith.mulf %141, %150 : vector<8x256xf32>
    %152 = vector.broadcast %133 : vector<1x256xf32> to vector<8x256xf32>
    %153 = arith.mulf %151, %152 : vector<8x256xf32>
    %154 = vector.broadcast %135 : vector<1x256xf32> to vector<8x256xf32>
    %155 = arith.addf %153, %154 : vector<8x256xf32>
    %c0_63 = arith.constant 0 : index
    %c0_64 = arith.constant 0 : index
    %156 = vector.load %arg21[%c0_63, %c0_64] : memref<8x256xf32, #tpu.memory_space<vmem>>, vector<8x256xf32>
    tpu.vector_store %arg21[%c0_63, %c0_64], %155 {strides = array<i32>} : memref<8x256xf32, #tpu.memory_space<vmem>>, vector<8x256xf32>,
    %c1_i32 = arith.constant 1 : i32
    %157 = arith.cmpi eq, %arg1, %c1_i32 : i32
    %158 = arith.extui %157 : i1 to i32
    %c0_i32_65 = arith.constant 0 : i32
    %159 = arith.cmpi ne, %158, %c0_i32_65 : i32
    scf.if %159 {
      %c0_66 = arith.constant 0 : index
      %c0_67 = arith.constant 0 : index
      %160 = vector.load %arg16[%c0_66, %c0_67] : memref<1x256xf32, #tpu.memory_space<vmem>>, vector<1x256xf32>
      %c0_68 = arith.constant 0 : index
      %c0_69 = arith.constant 0 : index
      %161 = vector.load %arg17[%c0_68, %c0_69] : memref<1x256xf32, #tpu.memory_space<vmem>>, vector<1x256xf32>
      %cst_70 = arith.constant dense<0.000000e+00> : vector<8xf32>
      %162 = vector.multi_reduction <add>, %155, %cst_70 [1] : vector<8x256xf32> to vector<8xf32>
      %163 = vector.shape_cast %162 : vector<8xf32> to vector<8x1xf32>
      %cst_71 = arith.constant 2.560000e+02 : f32
      %164 = vector.broadcast %cst_71 : f32 to vector<8x1xf32>
      %165 = arith.divf %163, %164 : vector<8x1xf32>
      %166 = vector.broadcast %165 : vector<8x1xf32> to vector<8x256xf32>
      %167 = arith.subf %155, %166 : vector<8x256xf32>
      %168 = arith.mulf %167, %167 : vector<8x256xf32>
      %cst_72 = arith.constant dense<0.000000e+00> : vector<8xf32>
      %169 = vector.multi_reduction <add>, %168, %cst_72 [1] : vector<8x256xf32> to vector<8xf32>
      %170 = vector.shape_cast %169 : vector<8xf32> to vector<8x1xf32>
      %cst_73 = arith.constant 2.560000e+02 : f32
      %171 = vector.broadcast %cst_73 : f32 to vector<8x1xf32>
      %172 = arith.divf %170, %171 : vector<8x1xf32>
      %cst_74 = arith.constant 9.99999997E-7 : f32
      %173 = vector.broadcast %cst_74 : f32 to vector<8x1xf32>
      %174 = arith.addf %172, %173 : vector<8x1xf32>
      %175 = math.rsqrt %174 : vector<8x1xf32>
      %176 = vector.broadcast %175 : vector<8x1xf32> to vector<8x256xf32>
      %177 = arith.mulf %167, %176 : vector<8x256xf32>
      %178 = vector.broadcast %160 : vector<1x256xf32> to vector<8x256xf32>
      %179 = arith.mulf %177, %178 : vector<8x256xf32>
      %180 = vector.broadcast %161 : vector<1x256xf32> to vector<8x256xf32>
      %181 = arith.addf %179, %180 : vector<8x256xf32>
      %182 = arith.truncf %181 : vector<8x256xf32> to vector<8x256xbf16>
      %c0_75 = arith.constant 0 : index
      %c0_76 = arith.constant 0 : index
      %183 = vector.load %arg18[%c0_75, %c0_76] : memref<256x256xbf16, #tpu.memory_space<vmem>>, vector<256x256xbf16>
      %cst_77 = arith.constant dense<0.000000e+00> : vector<8x256xf32>
      %184 = tpu.matmul %182, %183, %cst_77 {dimension_numbers = #tpu.dot_dimension_numbers<[1], [0], [0], [1], [0, 0, 1, 1], [], []>} : vector<8x256xbf16>, vector<256x256xbf16>, vector<8x256xf32> -> vector<8x256xf32>
      %c0_78 = arith.constant 0 : index
      %c0_79 = arith.constant 0 : index
      %185 = vector.load %arg19[%c0_78, %c0_79] : memref<1x256xf32, #tpu.memory_space<vmem>>, vector<1x256xf32>
      %186 = vector.broadcast %185 : vector<1x256xf32> to vector<8x256xf32>
      %187 = arith.addf %184, %186 : vector<8x256xf32>
      %188 = arith.truncf %187 : vector<8x256xf32> to vector<8x256xbf16>
      %c0_80 = arith.constant 0 : index
      %c0_81 = arith.constant 0 : index
      %189 = vector.load %arg20[%c0_80, %c0_81] : memref<256x256xbf16, #tpu.memory_space<vmem>>, vector<256x256xbf16>
      %cst_82 = arith.constant dense<0.000000e+00> : vector<8x256xf32>
      %190 = tpu.matmul %188, %189, %cst_82 {dimension_numbers = #tpu.dot_dimension_numbers<[1], [0], [0], [1], [0, 0, 1, 1], [], []>} : vector<8x256xbf16>, vector<256x256xbf16>, vector<8x256xf32> -> vector<8x256xf32>
      %c0_83 = arith.constant 0 : index
      %c0_84 = arith.constant 0 : index
      %191 = vector.load %arg22[%c0_83, %c0_84] : memref<8x256xf32, #tpu.memory_space<vmem>>, vector<8x256xf32>
      tpu.vector_store %arg22[%c0_83, %c0_84], %190 {strides = array<i32>} : memref<8x256xf32, #tpu.memory_space<vmem>>, vector<8x256xf32>,
    } else {
    }
    return
  }
  func.func @transform_0(%arg0: i32, %arg1: i32) -> (i32, i32) {
    %c0_i32 = arith.constant 0 : i32
    %c0_i32_0 = arith.constant 0 : i32
    return %arg0, %c0_i32 : i32, i32
  }
  func.func @transform_1(%arg0: i32, %arg1: i32) -> (i32, i32, i32, i32) {
    %c0_i32 = arith.constant 0 : i32
    %c0_i32_0 = arith.constant 0 : i32
    %c0_i32_1 = arith.constant 0 : i32
    %c0_i32_2 = arith.constant 0 : i32
    return %arg0, %c0_i32, %c0_i32_0, %c0_i32_1 : i32, i32, i32, i32
  }
  func.func @transform_2(%arg0: i32, %arg1: i32) -> (i32, i32, i32) {
    %c0_i32 = arith.constant 0 : i32
    %c0_i32_0 = arith.constant 0 : i32
    %c0_i32_1 = arith.constant 0 : i32
    return %arg1, %c0_i32, %c0_i32_0 : i32, i32, i32
  }
  func.func @transform_3(%arg0: i32, %arg1: i32) -> (i32, i32, i32) {
    %c0_i32 = arith.constant 0 : i32
    %c0_i32_0 = arith.constant 0 : i32
    %c0_i32_1 = arith.constant 0 : i32
    return %arg1, %c0_i32, %c0_i32_0 : i32, i32, i32
  }
  func.func @transform_4(%arg0: i32, %arg1: i32) -> (i32, i32, i32) {
    %c0_i32 = arith.constant 0 : i32
    %c0_i32_0 = arith.constant 0 : i32
    %c0_i32_1 = arith.constant 0 : i32
    return %arg1, %c0_i32, %c0_i32_0 : i32, i32, i32
  }
  func.func @transform_5(%arg0: i32, %arg1: i32) -> (i32, i32, i32) {
    %c0_i32 = arith.constant 0 : i32
    %c0_i32_0 = arith.constant 0 : i32
    %c0_i32_1 = arith.constant 0 : i32
    return %arg1, %c0_i32, %c0_i32_0 : i32, i32, i32
  }
  func.func @transform_6(%arg0: i32, %arg1: i32) -> (i32, i32, i32) {
    %c0_i32 = arith.constant 0 : i32
    %c0_i32_0 = arith.constant 0 : i32
    %c0_i32_1 = arith.constant 0 : i32
    return %arg1, %c0_i32, %c0_i32_0 : i32, i32, i32
  }
  func.func @transform_7(%arg0: i32, %arg1: i32) -> (i32, i32, i32) {
    %c0_i32 = arith.constant 0 : i32
    %c0_i32_0 = arith.constant 0 : i32
    %c0_i32_1 = arith.constant 0 : i32
    return %arg1, %c0_i32, %c0_i32_0 : i32, i32, i32
  }
  func.func @transform_8(%arg0: i32, %arg1: i32) -> (i32, i32, i32) {
    %c0_i32 = arith.constant 0 : i32
    %c0_i32_0 = arith.constant 0 : i32
    %c0_i32_1 = arith.constant 0 : i32
    return %arg1, %c0_i32, %c0_i32_0 : i32, i32, i32
  }
  func.func @transform_9(%arg0: i32, %arg1: i32) -> (i32, i32, i32) {
    %c0_i32 = arith.constant 0 : i32
    %c0_i32_0 = arith.constant 0 : i32
    %c0_i32_1 = arith.constant 0 : i32
    return %arg1, %c0_i32, %c0_i32_0 : i32, i32, i32
  }
  func.func @transform_10(%arg0: i32, %arg1: i32) -> (i32, i32, i32) {
    %c0_i32 = arith.constant 0 : i32
    %c0_i32_0 = arith.constant 0 : i32
    %c0_i32_1 = arith.constant 0 : i32
    return %arg1, %c0_i32, %c0_i32_0 : i32, i32, i32
  }
  func.func @transform_11(%arg0: i32, %arg1: i32) -> (i32, i32, i32) {
    %c0_i32 = arith.constant 0 : i32
    %c0_i32_0 = arith.constant 0 : i32
    %c0_i32_1 = arith.constant 0 : i32
    return %arg1, %c0_i32, %c0_i32_0 : i32, i32, i32
  }
  func.func @transform_12(%arg0: i32, %arg1: i32) -> (i32, i32, i32) {
    %c0_i32 = arith.constant 0 : i32
    %c0_i32_0 = arith.constant 0 : i32
    %c0_i32_1 = arith.constant 0 : i32
    return %arg1, %c0_i32, %c0_i32_0 : i32, i32, i32
  }
  func.func @transform_13(%arg0: i32, %arg1: i32) -> (i32, i32, i32) {
    %c0_i32 = arith.constant 0 : i32
    %c0_i32_0 = arith.constant 0 : i32
    %c0_i32_1 = arith.constant 0 : i32
    return %arg1, %c0_i32, %c0_i32_0 : i32, i32, i32
  }
  func.func @transform_14(%arg0: i32, %arg1: i32) -> (i32, i32) {
    %c0_i32 = arith.constant 0 : i32
    %c0_i32_0 = arith.constant 0 : i32
    %c0_i32_1 = arith.constant 0 : i32
    return %c0_i32, %c0_i32_0 : i32, i32
  }
  func.func @transform_15(%arg0: i32, %arg1: i32) -> (i32, i32) {
    %c0_i32 = arith.constant 0 : i32
    %c0_i32_0 = arith.constant 0 : i32
    %c0_i32_1 = arith.constant 0 : i32
    return %c0_i32, %c0_i32_0 : i32, i32
  }
  func.func @transform_16(%arg0: i32, %arg1: i32) -> (i32, i32) {
    %c0_i32 = arith.constant 0 : i32
    %c0_i32_0 = arith.constant 0 : i32
    %c0_i32_1 = arith.constant 0 : i32
    return %c0_i32, %c0_i32_0 : i32, i32
  }
  func.func @transform_17(%arg0: i32, %arg1: i32) -> (i32, i32) {
    %c0_i32 = arith.constant 0 : i32
    %c0_i32_0 = arith.constant 0 : i32
    %c0_i32_1 = arith.constant 0 : i32
    return %c0_i32, %c0_i32_0 : i32, i32
  }
  func.func @transform_18(%arg0: i32, %arg1: i32) -> (i32, i32) {
    %c0_i32 = arith.constant 0 : i32
    %c0_i32_0 = arith.constant 0 : i32
    %c0_i32_1 = arith.constant 0 : i32
    return %c0_i32, %c0_i32_0 : i32, i32
  }
  func.func @transform_19(%arg0: i32, %arg1: i32) -> (i32, i32) {
    %c0_i32 = arith.constant 0 : i32
    %c0_i32_0 = arith.constant 0 : i32
    return %arg0, %c0_i32 : i32, i32
  }
  func.func @transform_20(%arg0: i32, %arg1: i32) -> (i32, i32) {
    %c0_i32 = arith.constant 0 : i32
    %c0_i32_0 = arith.constant 0 : i32
    return %arg0, %c0_i32 : i32, i32
  }
}

</mosaic_0001>

<bundles_post_ra>
// kernel: mygpt_forward.1
= control target key start
LH: loop header
LB: loop body
LE: loop exit
PB: predicated region body
PF: predicated region fallthrough
CT: control target
= control target key end

     0   :  { %s6348_s0 = inlined_call_operand.vmem [shape: f32[16,256], index: 0, kind: input, shape index: {}]   ;;  %s6349_s1 = inlined_call_operand.vmem [shape: f32[2,4,8,8], index: 1, kind: input, shape index: {}]   ;;  %s6350_s2 = inlined_call_operand.vmem [shape: bf16[2,256,768], index: 2, kind: input, shape index: {}]   ;;  %s6351_s3 = inlined_call_operand.vmem [shape: f32[2,1,768], index: 3, kind: input, shape index: {}]   ;;  %s6352_s4 = inlined_call_operand.vmem [shape: bf16[2,256,256], index: 4, kind: input, shape index: {}]   ;;  %s6353_s5 = inlined_call_operand.vmem [shape: f32[2,1,256], index: 5, kind: input, shape index: {}]   ;;  %s6354_s6 = inlined_call_operand.vmem [shape: f32[2,1,256], index: 6, kind: input, shape index: {}]   ;;  %s6355_s7 = inlined_call_operand.vmem [shape: f32[2,1,256], index: 7, kind: input, shape index: {}]   ;;  %s6356_s8 = inlined_call_operand.vmem [shape: bf16[2,256,512], index: 8, kind: input, shape index: {}]   ;;  %s6357_s9 = inlined_call_operand.vmem [shape: f32[2,1,512], index: 9, kind: input, shape index: {}]   ;;  %s6358_s10 = inlined_call_operand.vmem [shape: bf16[2,512,256], index: 10, kind: input, shape index: {}]   ;;  %s6359_s11 = inlined_call_operand.vmem [shape: f32[2,1,256], index: 11, kind: input, shape index: {}]   ;;  %s6360_s12 = inlined_call_operand.vmem [shape: f32[2,1,256], index: 12, kind: input, shape index: {}]   ;;  %s6361_s13 = inlined_call_operand.vmem [shape: f32[2,1,256], index: 13, kind: input, shape index: {}]   ;;  %s6362_s14 = inlined_call_operand.vmem [shape: f32[1,256], index: 14, kind: input, shape index: {}]   ;;  %s6363_s15 = inlined_call_operand.vmem [shape: f32[1,256], index: 15, kind: input, shape index: {}]   ;;  %s6364_s16 = inlined_call_operand.vmem [shape: bf16[256,256], index: 16, kind: input, shape index: {}]   ;;  %s6365_s17 = inlined_call_operand.vmem [shape: f32[1,256], index: 17, kind: input, shape index: {}]   ;;  %s6366_s18 = inlined_call_operand.vmem [shape: bf16[256,256], index: 18, kind: input, shape index: {}]   ;;  %s6367_s19 = inlined_call_operand.hbm [shape: f32[16,256], index: 19, kind: output, shape index: {0}]   ;;  %s6368_s20 = inlined_call_operand.vmem [shape: f32[16,256], index: 20, kind: output, shape index: {1}]  }
   0x1   :  { %6388 = sst [smem:[#allocation20_spill]] %s6348_s0 }
   0x2   :  { %6389 = sst [smem:[#allocation21_spill]] %s6349_s1 }
   0x3   :  { %6390 = sst [smem:[#allocation22_spill]] %s6350_s2 }
   0x4   :  { %6391 = sst [smem:[#allocation23_spill]] %s6351_s3 }
   0x5   :  { %6392 = sst [smem:[#allocation24_spill]] %s6352_s4 }
   0x6   :  { %6393 = sst [smem:[#allocation25_spill]] %s6355_s7 }
   0x7   :  { %6394 = sst [smem:[#allocation26_spill]] %s6356_s8 }
   0x8   :  { %6395 = sst [smem:[#allocation27_spill]] %s6357_s9 }
   0x9   :  { %6396 = sst [smem:[#allocation28_spill]] %s6361_s13 }
   0xa   :  { %6397 = sst [smem:[#allocation29_spill]] %s6362_s14 }
   0xb   :  { %6398 = sst [smem:[#allocation30_spill]] %s6363_s15 }
   0xc   :  { %6399 = sst [smem:[#allocation31_spill]] %s6364_s16 }
   0xd   :  { %6400 = sst [smem:[#allocation32_spill]] %s6365_s17 }
   0xe   :  { %6401 = sst [smem:[#allocation33_spill]] %s6366_s18 }
   0xf   :  { %6402 = sst [smem:[#allocation34_spill]] %s6367_s19 }
  0x10   :  { %6403 = sst [smem:[#allocation35_spill]] %s6368_s20 }
  0x11   :  { %26 = vsyncpa [#allocation3], 0 }
  0x12   :  { %28 = vsyncpa [#allocation3 + $0x1], 0  ;;  %s5486_s1 = smov 0   ;;  %s5488_s22 = smov 0  }
  0x13   :  { %s5490_s23 = smov 0   ;;  %s5492_s24 = smov 0  }
  0x14   :  { %s5494_s2 = smov 0   ;;  %s5496_s25 = smov 0  }
  0x15   :  { %s5498_s3 = smov 0   ;;  %s5500_s26 = smov 0  }
  0x16 LB: > { %6404 = sst [smem:[#allocation5_spill]] %s5347_s1  ;;  %s4258_s27 = sadd.s32 4294967295, %s5375_s26   ;;  %s5375_s26 = sphi %s5500_s26, %s34_s26   ;;  %s5371_s3 = sphi %s5498_s3, %s6460_s3   ;;  %s5367_s25 = sphi %s5496_s25, %s6459_s25   ;;  %s5363_s2 = sphi %s5494_s2, %s6458_s2   ;;  %s5359_s24 = sphi %s5492_s24, %s6457_s24   ;;  %s5355_s23 = sphi %s5490_s23, %s6456_s23   ;;  %s5351_s22 = sphi %s5488_s22, %s6455_s22   ;;  %s5347_s1 = sphi %s5486_s1, %s6454_s1  }
  0x17   : > { %6405 = sst [smem:[#allocation6_spill]] %s5351_s22  ;;  %s4259_s28 = sadd.s32 4294967294, %s5375_s26  }
  0x18   : > { %6406 = sst [smem:[#allocation7_spill]] %s5355_s23  ;;  %s43_s4 = sadd.s32 1, %s5367_s25 }
  0x19   : > { %6407 = sst [smem:[#allocation8_spill]] %s5359_s24  ;;  %p44_p0 = scmp.ge.s32.totalorder %s43_s4, 2 }
  0x1a   : > { %6408 = sst [smem:[#allocation9_spill]] %s5363_s2  ;;  %s46_s29 = sadd.s32 1, %s5371_s3 }
  0x1b   : > { %6409 = sst [smem:[#allocation10_spill]] %s5367_s25  ;;  %p532_p1 = scmp.ne.s32.totalorder %s5355_s23, %s5351_s22 }
  0x1c   : > { %6410 = sst [smem:[#allocation11_spill]] %s5371_s3  ;;  %p533_p2 = scmp.eq.s32.totalorder %s4258_s27, 3 }
  0x1d   : > { %6411 = sst [smem:[#allocation12_spill]] %s5375_s26  ;;  %s6462_s4 = smov (%p44_p0, %s43_s4), 0 }
  0x1e   : > { %6412 = sst [smem:[#allocation13_spill]] %s6462_s4  ;;  %s6464_s29 = smov (!%p44_p0, %s46_s29), %s5371_s3 }
  0x1f   : > { %p5535_p3 = por %p533_p2, %p532_p1  ;;  %p538_p4 = scmp.ne.s32.totalorder %s5351_s22, %s5347_s1 }
  0x20   : > { %p48_p5 = scmp.ge.s32.totalorder %s6464_s29, 2  ;;  %p539_p6 = scmp.eq.s32.totalorder %s4259_s28, 3 }
  0x21   : > { %s6413_s30 = scalar_select %p5535_p3, 1, 0 }
  0x22   : > { %p4262_p7 = scmp.ge.s32.totalorder %s5375_s26, 1  ;;  %p702_p8 = scmp.lt.s32.totalorder %s5375_s26, 5 }
  0x23   : > { %6414 = sst [smem:[#allocation14_spill]] %s6413_s30  ;;  %s6466_s29 = smov (%p48_p5, %s6464_s29), 0 }
  0x24   : > { %6415 = sst [smem:[#allocation15_spill]] %s6466_s29  ;;  %p5545_p9 = por %p539_p6, %p538_p4 }
  0x25   : > { %p703_p10 = pnand %p4262_p7, %p702_p8  ;;  %s519_s21 = ssub.s32 %s5371_s3, %s6466_s29 }
  0x26   : > { %s6416_s0 = scalar_select %p5545_p9, 1, 0 }
  0x27   : > { %s522_s27 = sadd.s32 1, %s5355_s23  ;;  %p520_p11 = scmp.eq.s32.totalorder %s519_s21, 0 }
  0x28   : > { %6417 = sst [smem:[#allocation16_spill]] %s6416_s0  ;;  %706 = sbr.rel (%p703_p10) target bundleno = 3297 (0xce1), region = 96 }
  0x29   : > { %s5553_s4 = scalar_select %p520_p11, %s5355_s23, %s522_s27  }
  0x2b   : > { %6418 = sst [smem:[#allocation17_spill]] %s5553_s4 }
  0x2d   : > { %s6383_s28 = sand.u32 1, %s5351_s22   ;;  %p822_p12 = scmp.lt.s32.totalorder %s5363_s2, 1 }
  0x2e   : > { %s4263_s25 = sshll.u32 %s6383_s28, 4  ;;  %p832_p13 = scmp.lt.s32.totalorder %s5359_s24, 1 }
  0x2f   : > { %s823_s1 = scalar_select %p822_p12, %s5363_s2, 1 }
  0x30   : > { %s833_s0 = scalar_select %p832_p13, %s5359_s24, 1 }
  0x31   : > { %s4619_s26 = sshll.u32 %s823_s1, 4  ;;  %s4620_s29 = sshll.u32 %s823_s1, 5 }
  0x32   : > { %s6419_s27 = sld [smem:[#allocation20_spill]]  ;;  %s4690_s15 = smul.u32 768, %s833_s0 }
  0x33   : > { %s6420_s30 = sld [smem:[#allocation21_spill]]  ;;  %s4621_s14 = sshll.u32 %s833_s0, 8 }
  0x34   : > { %s4691_s18 = smul.u32 6, %s833_s0  ;;  %s6422_s28 = sld [smem:[#allocation24_spill]] }
  0x35   : > { %s6424_s1 = sld [smem:[#allocation22_spill]]  ;;  %s5580_s3 = sshll.u32 %s833_s0, 1 }
  0x36   : > { %s6425_s19 = sld [smem:[#allocation23_spill]]  ;;  %s4276_s21 = sshll.u32 %s833_s0, 2 }
  0x37   : > { %s6427_s8 = sld [smem:[#allocation26_spill]]  ;;  %s5631_s22 = scalar_lea.vmem [#allocation2], %s4263_s25 }
  0x38   : > { %s826_s4 = scalar_lea.vmem %s6419_s27, %s4619_s26  ;;  %s6428_s9 = sld [smem:[#allocation27_spill]] }
  0x39   : > { %s5568_s17 = scalar_lea.vmem %s6420_s30, %s4620_s29  ;;  %s875_s30 = scalar_lea.vmem %s6359_s11, %s5580_s3 }
  0x3a   : > { %6421 = sst [smem:[#allocation18_spill]] %s5568_s17  ;;  %s5573_s20 = scalar_lea.vmem %s6422_s28, %s4621_s14 }
  0x3b   : > { %6423 = sst [smem:[#allocation19_spill]] %s5573_s20  ;;  %s5578_s13 = scalar_lea.vmem %s6424_s1, %s4690_s15 }
  0x3c   : > { %s5585_s23 = scalar_lea.vmem %s6425_s19, %s4691_s18  ;;  %s4622_s1 = sshll.u32 %s833_s0, 9 }
  0x3d   : > { %s5602_s17 = scalar_lea.vmem %s6427_s8, %s4622_s1  ;;  %s5612_s24 = scalar_lea.vmem %s6358_s10, %s4622_s1 }
  0x3e   : > { %s5607_s14 = scalar_lea.vmem %s6428_s9, %s4276_s21  ;;  %s879_s20 = scalar_lea.vmem %s6360_s12, %s5580_s3 }
  0x3f   : > { %s6429_s8 = sld [smem:[#allocation28_spill]] }
  0x40   : > { %s6430_s19 = sld [smem:[#allocation35_spill]] }
  0x41   : > { %s6431_s1 = sld [smem:[#allocation8_spill]] }
  0x45   : > { %s883_s7 = scalar_lea.vmem %s6429_s8, %s5580_s3 }
  0x46   : > { %s5629_s9 = scalar_lea.vmem %s6430_s19, %s4619_s26 }
  0x47   : > { %p4284_p0 = scmp.ne.s32.totalorder %s6431_s1, 0 }
  0x49   : > { %893 = sbr.rel (%p4284_p0) target bundleno = 80 (0x50), region = 100 }
  0x4e   : > { %v894_v0 = vld [vmem:[%s826_s4] sm:$0xff]  ;;  %v895_v1 = vld [vmem:[%s826_s4 + $0x8] sm:$0xff] }
  0x4f   : > { %896 = vst [vmem:[%s5631_s22] sm:$0xff] %v894_v0  ;;  %897 = vst [vmem:[%s5631_s22 + $0x8] sm:$0xff] %v895_v1 }
  0x50 PF: > { %v4771_v2 = vld [vmem:[%s5578_s13 + $0x15c] ss:$24 sps:$4 sm:$0xff]   ;;  %v4773_v3 = vld [vmem:[%s5578_s13 + $0x158] ss:$24 sps:$4 sm:$0xff]   ;;  %v4777_v6 = vld [vmem:[%s5578_s13 + $0x12c] ss:$24 sps:$4 sm:$0xff]   ;;  %s6435_s16 = scalar_lea.vmem %s6354_s6, %s5580_s3 }
  0x51   : > { %1551 = vmatprep.subr.bf16.mxu1 %v4771_v2  ;;  %v4774_v4 = vld [vmem:[%s5578_s13 + $0x154] ss:$24 sps:$4 sm:$0xff]   ;;  %v4776_v5 = vld [vmem:[%s5578_s13 + $0x150] ss:$24 sps:$4 sm:$0xff]   ;;  %v4780_v8 = vld [vmem:[%s5578_s13 + $0x124] ss:$24 sps:$4 sm:$0xff]  }
  0x52   : > { %1552 = vmatpush1.bf16.msra.mxu1 %v4773_v3  ;;  %v4779_v7 = vld [vmem:[%s5578_s13 + $0x128] ss:$24 sps:$4 sm:$0xff]   ;;  %1510 = vmatprep.subr.bf16.mxu0 %v4774_v4  ;;  %v4783_v10 = vld [vmem:[%s5578_s13 + $0xfc] ss:$24 sps:$4 sm:$0xff]   ;;  %v4785_v11 = vld [vmem:[%s5578_s13 + $0xf8] ss:$24 sps:$4 sm:$0xff]  }
  0x53   : > { %1511 = vmatpush1.bf16.msra.mxu0 %v4776_v5  ;;  %1553 = vmatprep.subr.bf16.mxu1 %v4777_v6  ;;  %v4782_v9 = vld [vmem:[%s5578_s13 + $0x120] ss:$24 sps:$4 sm:$0xff]   ;;  %v4786_v12 = vld [vmem:[%s5578_s13 + $0xf4] ss:$24 sps:$4 sm:$0xff]   ;;  %v4788_v14 = vld [vmem:[%s5578_s13 + $0xf0] ss:$24 sps:$4 sm:$0xff]  }
  0x54   : > { %1512 = vmatprep.subr.bf16.mxu0 %v4780_v8  ;;  %v4789_v13 = vld [vmem:[%s5578_s13 + $0xcc] ss:$24 sps:$4 sm:$0xff]   ;;  %v4791_v16 = vld [vmem:[%s5578_s13 + $0xc8] ss:$24 sps:$4 sm:$0xff]   ;;  %v4795_v17 = vld [vmem:[%s5578_s13 + $0x9c] ss:$24 sps:$4 sm:$0xff]  }
  0x55   : > { %v4792_v15 = vld [vmem:[%s5578_s13 + $0xc4] ss:$24 sps:$4 sm:$0xff]   ;;  %v4794_v18 = vld [vmem:[%s5578_s13 + $0xc0] ss:$24 sps:$4 sm:$0xff]   ;;  %v4798_v19 = vld [vmem:[%s5578_s13 + $0x94] ss:$24 sps:$4 sm:$0xff]  }
  0x56   : > { %1554 = vmatpush1.bf16.msra.mxu1 %v4779_v7  ;;  %v4797_v20 = vld [vmem:[%s5578_s13 + $0x98] ss:$24 sps:$4 sm:$0xff]   ;;  %v4801_v21 = vld [vmem:[%s5578_s13 + $0x6c] ss:$24 sps:$4 sm:$0xff]   ;;  %v4803_v24 = vld [vmem:[%s5578_s13 + $0x68] ss:$24 sps:$4 sm:$0xff]   ;;  %v1000_v7 = vlaneseq }
  0x57   : > { %1555 = vmatprep.subr.bf16.mxu1 %v4783_v10  ;;  %1513 = vmatpush1.bf16.msra.mxu0 %v4782_v9  ;;  %v4800_v22 = vld [vmem:[%s5578_s13 + $0x90] ss:$24 sps:$4 sm:$0xff]   ;;  %v4804_v23 = vld [vmem:[%s5578_s13 + $0x64] ss:$24 sps:$4 sm:$0xff]   ;;  %v4806_v26 = vld [vmem:[%s5578_s13 + $0x60] ss:$24 sps:$4 sm:$0xff]  }
  0x58   : > { %1514 = vmatprep.subr.bf16.mxu0 %v4786_v12  ;;  %v4807_v25 = vld [vmem:[%s5578_s13 + $0x3c] ss:$24 sps:$4 sm:$0xff]   ;;  %v4809_v28 = vld [vmem:[%s5578_s13 + $0x38] ss:$24 sps:$4 sm:$0xff]   ;;  %v4813_v29 = vld [vmem:[%s5578_s13 + $0xc] ss:$24 sps:$4 sm:$0xff]  }
  0x59   : > { %v4810_v27 = vld [vmem:[%s5578_s13 + $0x34] ss:$24 sps:$4 sm:$0xff]   ;;  %v4812_v30 = vld [vmem:[%s5578_s13 + $0x30] ss:$24 sps:$4 sm:$0xff]   ;;  %v4816_v31 = vld [vmem:[%s5578_s13 + $0x4] ss:$24 sps:$4 sm:$0xff]  }
  0x5a   : > { %1556 = vmatpush1.bf16.msra.mxu1 %v4785_v11  ;;  %v4815_v32 = vld [vmem:[%s5578_s13 + $0x8] ss:$24 sps:$4 sm:$0xff]   ;;  %v4819_v33 = vld [vmem:[%s5578_s13 + $0x2dc] ss:$24 sps:$4 sm:$0xff]   ;;  %v4821_v36 = vld [vmem:[%s5578_s13 + $0x2d8] ss:$24 sps:$4 sm:$0xff]  }
  0x5b   : > { %1557 = vmatprep.subr.bf16.mxu1 %v4789_v13  ;;  %1515 = vmatpush1.bf16.msra.mxu0 %v4788_v14  ;;  %v4818_v34 = vld [vmem:[%s5578_s13] ss:$24 sps:$4 sm:$0xff]   ;;  %v4822_v35 = vld [vmem:[%s5578_s13 + $0x2d4] ss:$24 sps:$4 sm:$0xff]   ;;  %v4824_v38 = vld [vmem:[%s5578_s13 + $0x2d0] ss:$24 sps:$4 sm:$0xff]  }
  0x5c   : > { %1516 = vmatprep.subr.bf16.mxu0 %v4792_v15  ;;  %v4825_v37 = vld [vmem:[%s5578_s13 + $0x2ac] ss:$24 sps:$4 sm:$0xff]   ;;  %v4827_v40 = vld [vmem:[%s5578_s13 + $0x2a8] ss:$24 sps:$4 sm:$0xff]   ;;  %v4831_v41 = vld [vmem:[%s5578_s13 + $0x27c] ss:$24 sps:$4 sm:$0xff]  }
  0x5d   : > { %v4828_v39 = vld [vmem:[%s5578_s13 + $0x2a4] ss:$24 sps:$4 sm:$0xff]   ;;  %v4830_v42 = vld [vmem:[%s5578_s13 + $0x2a0] ss:$24 sps:$4 sm:$0xff]   ;;  %v4834_v43 = vld [vmem:[%s5578_s13 + $0x274] ss:$24 sps:$4 sm:$0xff]  }
  0x5e   : > { %1558 = vmatpush1.bf16.msra.mxu1 %v4791_v16  ;;  %v4833_v44 = vld [vmem:[%s5578_s13 + $0x278] ss:$24 sps:$4 sm:$0xff]   ;;  %v4837_v45 = vld [vmem:[%s5578_s13 + $0x24c] ss:$24 sps:$4 sm:$0xff]   ;;  %v4839_v47 = vld [vmem:[%s5578_s13 + $0x248] ss:$24 sps:$4 sm:$0xff]  }
  0x5f   : > { %1559 = vmatprep.subr.bf16.mxu1 %v4795_v17  ;;  %1517 = vmatpush1.bf16.msra.mxu0 %v4794_v18  ;;  %v4836_v46 = vld [vmem:[%s5578_s13 + $0x270] ss:$24 sps:$4 sm:$0xff]   ;;  %v4840_v48 = vld [vmem:[%s5578_s13 + $0x244] ss:$24 sps:$4 sm:$0xff]   ;;  %v4842_v50 = vld [vmem:[%s5578_s13 + $0x240] ss:$24 sps:$4 sm:$0xff]  }
  0x60   : > { %1518 = vmatprep.subr.bf16.mxu0 %v4798_v19  ;;  %v899_v49 = vld [vmem:[%s5631_s22 + $0x8] sm:$0xff]  ;;  %v898_v3 = vld [vmem:[%s5631_s22] sm:$0xff]  ;;  %v5377_v6 = vmov 0.0   ;;  %vm5378_vm0 = vmmov 0   ;;  %v5709_v8 = vshrl.u32 %v1000_v7, 7  ;;  %vm1673_vm1 = vcmask 523264  }
  0x61   : > { %v4843_v51 = vld [vmem:[%s5578_s13 + $0x21c] ss:$24 sps:$4 sm:$0xff]   ;;  %v901_v52 = vpack.c.bf16 %v899_v49, %v899_v49  ;;  %v4845_v54 = vld [vmem:[%s5578_s13 + $0x218] ss:$24 sps:$4 sm:$0xff]   ;;  %v4849_v55 = vld [vmem:[%s5578_s13 + $0x1ec] ss:$24 sps:$4 sm:$0xff]   ;;  %v5702_v5 = vpack.c.bf16 %v898_v3, %v898_v3 }
  0x62   : > { %1560 = vmatpush1.bf16.msra.mxu1 %v4797_v20  ;;  %v4846_v53 = vld [vmem:[%s5578_s13 + $0x214] ss:$24 sps:$4 sm:$0xff]   ;;  %v4848_v56 = vld [vmem:[%s5578_s13 + $0x210] ss:$24 sps:$4 sm:$0xff]   ;;  %v4852_v57 = vld [vmem:[%s5578_s13 + $0x1e4] ss:$24 sps:$4 sm:$0xff]  }
  0x63   : > { %1561 = vmatprep.subr.bf16.mxu1 %v4801_v21  ;;  %1519 = vmatpush1.bf16.msra.mxu0 %v4800_v22  ;;  %v4851_v58 = vld [vmem:[%s5578_s13 + $0x1e8] ss:$24 sps:$4 sm:$0xff]   ;;  %v4855_v59 = vld [vmem:[%s5578_s13 + $0x1bc] ss:$24 sps:$4 sm:$0xff]   ;;  %v4857_v62 = vld [vmem:[%s5578_s13 + $0x1b8] ss:$24 sps:$4 sm:$0xff]  }
  0x64   : > { %1520 = vmatprep.subr.bf16.mxu0 %v4804_v23  ;;  %1583 = vmatprep.mubr.bf16.mxu1 %v901_v52  ;;  %v4854_v60 = vld [vmem:[%s5578_s13 + $0x1e0] ss:$24 sps:$4 sm:$0xff]   ;;  %v4858_v61 = vld [vmem:[%s5578_s13 + $0x1b4] ss:$24 sps:$4 sm:$0xff]   ;;  %v4860_v0 = vld [vmem:[%s5578_s13 + $0x1b0] ss:$24 sps:$4 sm:$0xff]  }
  0x65   : > { %1542 = vmatprep.mubr.bf16.mxu0 %v901_v52  ;;  %v4861_v63 = vld [vmem:[%s5578_s13 + $0x18c] ss:$24 sps:$4 sm:$0xff]   ;;  %v4863_v2 = vld [vmem:[%s5578_s13 + $0x188] ss:$24 sps:$4 sm:$0xff]   ;;  %v1010_v9 = vsub.s32 2, %v5709_v8  ;;  %v5716_v11 = vsub.s32 0, %v5709_v8 }
  0x66   : > { %1562 = vmatpush1.bf16.msra.mxu1 %v4803_v24  ;;  %v4864_v1 = vld [vmem:[%s5578_s13 + $0x184] ss:$24 sps:$4 sm:$0xff]   ;;  %v4866_v4 = vld [vmem:[%s5578_s13 + $0x180] ss:$24 sps:$4 sm:$0xff]   ;;  %v1014_v12 = vsub.s32 3, %v5709_v8  ;;  %v5723_v14 = vsub.s32 1, %v5709_v8 }
  0x67   : > { %1563 = vmatprep.subr.bf16.mxu1 %v4807_v25  ;;  %1521 = vmatpush1.bf16.msra.mxu0 %v4806_v26  ;;  %v5713_v10 = vld [vmem:[%s5585_s23] sm:$0x3f]  ;;  %s5379_s8 = smov 64   ;;  %v4908_v3 = vld [vmem:[%s5578_s13 + $0x1f4] ss:$24 sps:$4 sm:$0xff]   ;;  %s6432_s25 = sld [smem:[#allocation18_spill]] }
  0x68   : > { %1522 = vmatprep.subr.bf16.mxu0 %v4810_v27  ;;  %v1011_v13 = vrot.slane %v5713_v10, %v1010_v9  ;;  %v1003_v15 = vrot.slane %v5713_v10, %v5716_v11  ;;  %v1015_v16 = vrot.slane %v5713_v10, %v1014_v12  ;;  %v1007_v19 = vrot.slane %v5713_v10, %v5723_v14  ;;  %v4893_v49 = vld [vmem:[%s5578_s13 + $0x2e4] ss:$24 sps:$4 sm:$0xff]   ;;  %s6434_s23 = scalar_lea.vmem %s6353_s5, %s5580_s3  ;;  %s6436_s29 = sld [smem:[#allocation25_spill]] }
  0x69   : > { %vm1858_vm2 = vcmask 64512   ;;  %vm1910_vm3 = vcmask 1043456  }
  0x6a   : > { %1564 = vmatpush1.bf16.msra.mxu1 %v4809_v28 }
  0x6b   : > { %1565 = vmatprep.subr.bf16.mxu1 %v4813_v29  ;;  %1523 = vmatpush1.bf16.msra.mxu0 %v4812_v30 }
  0x6c   : > { %1524 = vmatprep.subr.bf16.mxu0 %v4816_v31 }
  0x6e   : > { %1566 = vmatpush1.bf16.msra.mxu1 %v4815_v32  ;;  %s6437_s0 = scalar_lea.vmem %s6436_s29, %s5580_s3 }
  0x6f   : > { %1567 = vmatprep.subr.bf16.mxu1 %v4819_v33  ;;  %1525 = vmatpush1.bf16.msra.mxu0 %v4818_v34  ;;  %v4867_v33 = vld [vmem:[%s5578_s13 + $0x160] ss:$24 sps:$4 sm:$0xff]   ;;  %v4869_v34 = vld [vmem:[%s5578_s13 + $0x164] ss:$24 sps:$4 sm:$0xff]  }
  0x70   : > { %1526 = vmatprep.subr.bf16.mxu0 %v4822_v35  ;;  %v4872_v35 = vld [vmem:[%s5578_s13 + $0x134] ss:$24 sps:$4 sm:$0xff]  }
  0x72   : > { %1568 = vmatpush2.bf16.msra.mxu1 %v4821_v36  ;;  %v4870_v36 = vld [vmem:[%s5578_s13 + $0x130] ss:$24 sps:$4 sm:$0xff]  }
  0x73   : > { %1569 = vmatprep.subr.bf16.mxu1 %v4825_v37  ;;  %1527 = vmatpush2.bf16.msra.mxu0 %v4824_v38  ;;  %v4875_v37 = vld [vmem:[%s5578_s13 + $0x104] ss:$24 sps:$4 sm:$0xff]   ;;  %v4873_v38 = vld [vmem:[%s5578_s13 + $0x100] ss:$24 sps:$4 sm:$0xff]  }
  0x74   : > { %1528 = vmatprep.subr.bf16.mxu0 %v4828_v39  ;;  %v4878_v39 = vld [vmem:[%s5578_s13 + $0xd4] ss:$24 sps:$4 sm:$0xff]  }
  0x76   : > { %1570 = vmatpush2.bf16.msra.mxu1 %v4827_v40  ;;  %v4876_v40 = vld [vmem:[%s5578_s13 + $0xd0] ss:$24 sps:$4 sm:$0xff]  }
  0x77   : > { %1571 = vmatprep.subr.bf16.mxu1 %v4831_v41  ;;  %1529 = vmatpush2.bf16.msra.mxu0 %v4830_v42  ;;  %v4881_v41 = vld [vmem:[%s5578_s13 + $0xa4] ss:$24 sps:$4 sm:$0xff]   ;;  %v4879_v42 = vld [vmem:[%s5578_s13 + $0xa0] ss:$24 sps:$4 sm:$0xff]  }
  0x78   : > { %1530 = vmatprep.subr.bf16.mxu0 %v4834_v43  ;;  %v4884_v43 = vld [vmem:[%s5578_s13 + $0x74] ss:$24 sps:$4 sm:$0xff]  }
  0x7a   : > { %1572 = vmatpush2.bf16.msra.mxu1 %v4833_v44  ;;  %v4882_v44 = vld [vmem:[%s5578_s13 + $0x70] ss:$24 sps:$4 sm:$0xff]  }
  0x7b   : > { %1573 = vmatprep.subr.bf16.mxu1 %v4837_v45  ;;  %1531 = vmatpush2.bf16.msra.mxu0 %v4836_v46  ;;  %v4887_v45 = vld [vmem:[%s5578_s13 + $0x44] ss:$24 sps:$4 sm:$0xff]   ;;  %v4885_v46 = vld [vmem:[%s5578_s13 + $0x40] ss:$24 sps:$4 sm:$0xff]  }
  0x7c   : > { %1532 = vmatprep.subr.bf16.mxu0 %v4840_v48  ;;  %v4888_v48 = vld [vmem:[%s5578_s13 + $0x10] ss:$24 sps:$4 sm:$0xff]  }
  0x7e   : > { %1574 = vmatpush2.bf16.msra.mxu1 %v4839_v47  ;;  %v4890_v47 = vld [vmem:[%s5578_s13 + $0x14] ss:$24 sps:$4 sm:$0xff]  }
  0x7f   : > { %1575 = vmatprep.subr.bf16.mxu1 %v4843_v51  ;;  %1533 = vmatpush2.bf16.msra.mxu0 %v4842_v50  ;;  %v4891_v50 = vld [vmem:[%s5578_s13 + $0x2e0] ss:$24 sps:$4 sm:$0xff]   ;;  %v4896_v51 = vld [vmem:[%s5578_s13 + $0x2b4] ss:$24 sps:$4 sm:$0xff]  }
  0x80   : > { %1534 = vmatprep.subr.bf16.mxu0 %v4846_v53 }
  0x82   : > { %1576 = vmatpush2.bf16.msra.mxu1 %v4845_v54  ;;  %v4894_v54 = vld [vmem:[%s5578_s13 + $0x2b0] ss:$24 sps:$4 sm:$0xff]  }
  0x83   : > { %1577 = vmatprep.subr.bf16.mxu1 %v4849_v55  ;;  %1535 = vmatpush2.bf16.msra.mxu0 %v4848_v56  ;;  %v4899_v55 = vld [vmem:[%s5578_s13 + $0x284] ss:$24 sps:$4 sm:$0xff]  }
  0x84   : > { %1536 = vmatprep.subr.bf16.mxu0 %v4852_v57 }
  0x86   : > { %1578 = vmatpush2.bf16.msra.mxu1 %v4851_v58  ;;  %v4897_v58 = vld [vmem:[%s5578_s13 + $0x280] ss:$24 sps:$4 sm:$0xff]  }
  0x87   : > { %1579 = vmatprep.subr.bf16.mxu1 %v4855_v59  ;;  %1537 = vmatpush2.bf16.msra.mxu0 %v4854_v60  ;;  %v4902_v59 = vld [vmem:[%s5578_s13 + $0x254] ss:$24 sps:$4 sm:$0xff]  }
  0x88   : > { %1538 = vmatprep.subr.bf16.mxu0 %v4858_v61 }
  0x8a   : > { %1580 = vmatpush2.bf16.msra.mxu1 %v4857_v62  ;;  %v4900_v62 = vld [vmem:[%s5578_s13 + $0x250] ss:$24 sps:$4 sm:$0xff]  }
  0x8b   : > { %1581 = vmatprep.subr.bf16.mxu1 %v4861_v63  ;;  %1539 = vmatpush2.bf16.msra.mxu0 %v4860_v0  ;;  %v4905_v63 = vld [vmem:[%s5578_s13 + $0x224] ss:$24 sps:$4 sm:$0xff]  }
  0x8c   : > { %1540 = vmatprep.subr.bf16.mxu0 %v4864_v1 }
  0x8e   : > { %1582 = vmatpush2.bf16.msra.mxu1 %v4863_v2  ;;  %v4903_v2 = vld [vmem:[%s5578_s13 + $0x220] ss:$24 sps:$4 sm:$0xff]  }
  0x8f   : > { %1541 = vmatpush2.bf16.msra.mxu0 %v4866_v4  ;;  %4642 = vmatprep.subr.bf16.mxu1 %v5377_v6 }
  0x90   : > { %1592 = vmatprep.subr.bf16.mxu0 %v4869_v34 }
  0x91   : > { %1584 = vmatmul.mubr.bf16.vlgmr.msra.gmra.mxu1 %v5702_v5 }
  0x92   : > { %1543 = vmatmul.mubr.bf16.vlgmr.msra.gmra.mxu0 %v5702_v5  ;;  %4644 = vmatprep.mubr.msk.bf16.mxu1 %vm5378_vm0, %v5377_v6 }
  0x93   : > { %1624 = vmatprep.mubr.bf16.mxu0 %v901_v52  ;;  %1593 = vmatpush1.bf16.msra.mxu0 %v4867_v33 }
  0x94   : > { %1594 = vmatprep.subr.bf16.mxu0 %v4872_v35  ;;  %v1671_v35 = vld [vmem:[%s6432_s25 + $0x10] sm:$0xff] }
  0x97   : > { %1595 = vmatpush1.bf16.msra.mxu0 %v4870_v36 }
  0x98   : > { %1596 = vmatprep.subr.bf16.mxu0 %v4875_v37 }
  0x9b   : > { %1597 = vmatpush1.bf16.msra.mxu0 %v4873_v38 }
  0x9c   : > { %1598 = vmatprep.subr.bf16.mxu0 %v4878_v39 }
  0x9f   : > { %1599 = vmatpush1.bf16.msra.mxu0 %v4876_v40 }
  0xa0   : > { %1600 = vmatprep.subr.bf16.mxu0 %v4881_v41 }
  0xa3   : > { %1601 = vmatpush1.bf16.msra.mxu0 %v4879_v42  ;;  %v1672_v42 = vld [vmem:[%s6432_s25 + $0x18] sm:$0xff] }
  0xa4   : > { %1602 = vmatprep.subr.bf16.mxu0 %v4884_v43 }
  0xa7   : > { %1603 = vmatpush1.bf16.msra.mxu0 %v4882_v44 }
  0xa8   : > { %1604 = vmatprep.subr.bf16.mxu0 %v4887_v45 }
  0xab   : > { %1605 = vmatpush1.bf16.msra.mxu0 %v4885_v46 }
  0xac   : > { %1606 = vmatprep.subr.bf16.mxu0 %v4890_v47 }
  0xaf   : > { %1607 = vmatpush1.bf16.msra.mxu0 %v4888_v48 }
  0xb0   : > { %1608 = vmatprep.subr.bf16.mxu0 %v4893_v49 }
  0xb3   : > { %1609 = vmatpush2.bf16.msra.mxu0 %v4891_v50 }
  0xb4   : > { %1610 = vmatprep.subr.bf16.mxu0 %v4896_v51 }
  0xb7   : > { %1611 = vmatpush2.bf16.msra.mxu0 %v4894_v54  ;;  %v1018_v54 = vsub.s32 4, %v5709_v8 }
  0xb8   : > { %1612 = vmatprep.subr.bf16.mxu0 %v4899_v55 }
  0xbb   : > { %1613 = vmatpush2.bf16.msra.mxu0 %v4897_v58 }
  0xbc   : > { %1614 = vmatprep.subr.bf16.mxu0 %v4902_v59 }
  0xbf   : > { %1615 = vmatpush2.bf16.msra.mxu0 %v4900_v62 }
  0xc0   : > { %1616 = vmatprep.subr.bf16.mxu0 %v4905_v63 }
  0xc3   : > { %1617 = vmatpush2.bf16.msra.mxu0 %v4903_v2 }
  0xc4   : > { %1618 = vmatprep.subr.bf16.mxu0 %v4908_v3 }
 0x151   : > { %v1585_v17 = vpop.f32.mrf.mxu1 }
 0x152   : > { %v1586_v18 = vadd.f32 %v1585_v17, %v1011_v13  ;;  %v1544_v20 = vpop.f32.mrf.mxu0  ;;  %v4906_v13 = vld [vmem:[%s5578_s13 + $0x1f0] ss:$24 sps:$4 sm:$0xff]   ;;  %v4909_v17 = vld [vmem:[%s5578_s13 + $0x1c0] ss:$24 sps:$4 sm:$0xff]  }
 0x153   : > { %v1587_v21 = vpop.f32.mrf.mxu1  ;;  %v1545_v23 = vadd.f32 %v1544_v20, %v1003_v15  ;;  %v4911_v15 = vld [vmem:[%s5578_s13 + $0x1c4] ss:$24 sps:$4 sm:$0xff]   ;;  %1619 = vmatpush2.bf16.msra.mxu0 %v4906_v13 }
 0x154   : > { %v1653_v22 = vpack.c.bf16 %v1586_v18, %v1586_v18  ;;  %v5732_v24 = vadd.f32 %v1587_v21, %v1015_v16  ;;  %1646 = vrot.lane.b32.xlu0 %v1586_v18, %s5379_s8  ;;  %v1546_v25 = vpop.f32.mrf.mxu0  ;;  %1620 = vmatprep.subr.bf16.mxu0 %v4911_v15  ;;  %v4912_v21 = vld [vmem:[%s5578_s13 + $0x190] ss:$24 sps:$4 sm:$0xff]  }
 0x155   : > { %v1589_v26 = vpop.f32.mrf.mxu1  ;;  %v5735_v27 = vadd.f32 %v1546_v25, %v1007_v19  ;;  %v1641_v32 = vpack.c.bf16 %v1545_v23, %v1545_v23  ;;  %v4914_v19 = vld [vmem:[%s5578_s13 + $0x194] ss:$24 sps:$4 sm:$0xff]   ;;  %s6433_s13 = sld [smem:[#allocation19_spill]] }
 0x156   : > { %1650 = vrot.lane.b32.xlu1 %v5732_v24, %s5379_s8  ;;  %v1678_v28 = vsel %vm1673_vm1, %v1653_v22, 0  ;;  %v1548_v29 = vpop.f32.mrf.mxu0  ;;  %v1655_v60 = vpack.c.bf16 %v5732_v24, %v5732_v24  ;;  %v1669_v22 = vld [vmem:[%s6432_s25] sm:$0xff] }
 0x157   : > { %v1590_v30 = vpop.f32.mrf.mxu1  ;;  %4643 = vmatpush3.bf16.xpose.msra.mxu1 %v1678_v28  ;;  %v1643_v7 = vpack.c.bf16 %v5735_v27, %v5735_v27  ;;  %1621 = vmatpush2.bf16.msra.mxu0 %v4909_v17  ;;  %v1670_v29 = vld [vmem:[%s6432_s25 + $0x8] sm:$0xff] }
 0x158   : > { %1634 = vrot.lane.b32.xlu0 %v1545_v23, %s5379_s8  ;;  %4648 = vmatprep.subr.bf16.mxu1 %v5377_v6  ;;  %v1549_v31 = vpop.f32.mrf.mxu0  ;;  %v1770_v0 = vsel %vm1673_vm1, %v1655_v60, 0 }
 0x159   : > { %1622 = vmatprep.subr.bf16.mxu0 %v4914_v19 }
 0x15a   : > { %1638 = vrot.lane.b32.xlu1 %v5735_v27, %s5379_s8 }
 0x15b   : > { %1623 = vmatpush2.bf16.msra.mxu0 %v4912_v21 }
 0x15e   : > { %4645 = vmatmul.mubr.msk.bf16.vlgmr.msra.gmra.mxu1 %vm1673_vm1, %v1641_v32  ;;  %1625 = vmatmul.mubr.bf16.vlgmr.msra.gmra.mxu0 %v5702_v5 }
 0x15f   : > { %4650 = vmatprep.mubr.msk.bf16.mxu1 %vm5378_vm0, %v5377_v6 }
 0x1c6   : > { %v1647_v52 = vpop.permute.xlu0 %1646 }
 0x1c7   : > { %v1654_v53 = vpack.c.bf16 %v1647_v52, %v1647_v52 }
 0x1c8   : > { %v1651_v1 = vpop.permute.xlu1 %1650 }
 0x1c9   : > { %v1724_v56 = vsel %vm1673_vm1, %v1654_v53, 0  ;;  %v1656_v4 = vpack.c.bf16 %v1651_v1, %v1651_v1 }
 0x1ca   : > { %4649 = vmatpush3.bf16.xpose.msra.mxu1 %v1724_v56  ;;  %v1635_v57 = vpop.permute.xlu0 %1634  ;;  %v1019_v56 = vrot.slane %v5713_v10, %v1018_v54  ;;  %v4923_v54 = vld [vmem:[%s6433_s13 + $0x54] ss:$8 sps:$4 sm:$0xff]  }
 0x1cb   : > { %4654 = vmatprep.subr.bf16.mxu1 %v5377_v6  ;;  %v1642_v61 = vpack.c.bf16 %v1635_v57, %v1635_v57  ;;  %v1816_v16 = vsel %vm1673_vm1, %v1656_v4, 0 }
 0x1cc   : > { %v1639_v18 = vpop.permute.xlu1 %1638 }
 0x1cd   : > { %v1644_v20 = vpack.c.bf16 %v1639_v18, %v1639_v18 }
 0x1d1   : > { %4651 = vmatmul.mubr.msk.bf16.vlgmr.msra.gmra.mxu1 %vm1673_vm1, %v1642_v61 }
 0x1d2   : > { %4655 = vmatpush3.bf16.xpose.msra.mxu1 %v1770_v0  ;;  %4656 = vmatprep.mubr.msk.bf16.mxu1 %vm5378_vm0, %v5377_v6 }
 0x1d3   : > { %4660 = vmatprep.subr.bf16.mxu1 %v5377_v6 }
 0x1d9   : > { %4657 = vmatmul.mubr.msk.bf16.vlgmr.msra.gmra.mxu1 %vm1673_vm1, %v1643_v7 }
 0x1da   : > { %4661 = vmatpush3.bf16.xpose.msra.mxu1 %v1816_v16  ;;  %4662 = vmatprep.mubr.msk.bf16.mxu1 %vm5378_vm0, %v5377_v6 }
 0x1db   : > { %4666 = vmatprep.subr.bf16.mxu1 %v5377_v6 }
 0x1e1   : > { %4663 = vmatmul.mubr.msk.bf16.vlgmr.msra.gmra.mxu1 %vm1673_vm1, %v1644_v20 }
 0x1e2   : > { %4668 = vmatprep.mubr.msk.bf16.mxu1 %vm5378_vm0, %v5377_v6 }
 0x21e   : > { %v1714_v23 = vpop.f32.mrf.mxu1  ;;  %v1626_v55 = vpop.f32.mrf.mxu0 }
 0x21f   : > { %v1715_v24 = vadd.f32 %v1714_v23, %v1669_v22  ;;  %v1627_v58 = vadd.f32 %v1626_v55, %v1019_v56  ;;  %v1022_v23 = vsub.s32 5, %v5709_v8  ;;  %v4921_v55 = vld [vmem:[%s6433_s13 + $0x50] ss:$8 sps:$4 sm:$0xff]   ;;  %v4926_v56 = vld [vmem:[%s6433_s13 + $0x44] ss:$8 sps:$4 sm:$0xff]  }
 0x220   : > { %v4646_v25 = vpop.f32.mrf.mxu1  ;;  %v1628_v57 = vpop.f32.mrf.mxu0 }
 0x221   : > { %v1859_v26 = vsel %vm1858_vm2, %v1715_v24, -inf  ;;  %v1665_v60 = vpack.c.bf16 %v1627_v58, %v1627_v58 }
 0x222   : > { %1860 = vmax.xlane.f32.xlu0 %v1859_v26  ;;  %v1717_v27 = vpop.f32.mrf.mxu1  ;;  %v1630_v59 = vpop.f32.mrf.mxu0 }
 0x223   : > { %v1912_v62 = vsel %vm1910_vm3, %v1665_v60, 0  ;;  %v4927_v59 = vld [vmem:[%s6433_s13 + $0x30] ss:$8 sps:$4 sm:$0xff]   ;;  %v4932_v60 = vld [vmem:[%s6433_s13 + $0x24] ss:$8 sps:$4 sm:$0xff]  }
 0x224   : > { %v4647_v28 = vpop.f32.mrf.mxu1  ;;  %v1631_v61 = vpop.f32.mrf.mxu0  ;;  %4667 = vmatpush3.bf16.msra.mxu1 %v1912_v62  ;;  %v4935_v62 = vld [vmem:[%s6433_s13 + $0x14] ss:$8 sps:$4 sm:$0xff]  }
 0x225   : > { %4672 = vmatprep.subr.bf16.mxu1 %v5377_v6  ;;  %v4930_v61 = vld [vmem:[%s6433_s13 + $0x20] ss:$8 sps:$4 sm:$0xff]  }
 0x291   : > { %v1760_v30 = vpop.f32.mrf.mxu1 }
 0x292   : > { %v1761_v31 = vadd.f32 %v1760_v30, %v1670_v29 }
 0x293   : > { %v4652_v32 = vpop.f32.mrf.mxu1 }
 0x294   : > { %v1862_v33 = vsel %vm1858_vm2, %v1761_v31, -inf }
 0x295   : > { %1863 = vmax.xlane.f32.xlu1 %v1862_v33  ;;  %v1763_v5 = vpop.f32.mrf.mxu1 }
 0x297   : > { %v4653_v34 = vpop.f32.mrf.mxu1 }
 0x299   : > { %v1806_v36 = vpop.f32.mrf.mxu1 }
 0x29a   : > { %v1807_v37 = vadd.f32 %v1806_v36, %v1671_v35 }
 0x29b   : > { %v4658_v38 = vpop.f32.mrf.mxu1 }
 0x29c   : > { %v1865_v39 = vsel %vm1858_vm2, %v1807_v37, -inf }
 0x29d   : > { %1866 = vmax.xlane.f32.xlu0 %v1865_v39  ;;  %v1809_v40 = vpop.f32.mrf.mxu1 }
 0x29f   : > { %v4659_v41 = vpop.f32.mrf.mxu1 }
 0x2a1   : > { %v1852_v43 = vpop.f32.mrf.mxu1 }
 0x2a2   : > { %v1853_v44 = vadd.f32 %v1852_v43, %v1672_v42 }
 0x2a3   : > { %v4664_v45 = vpop.f32.mrf.mxu1 }
 0x2a4   : > { %v1868_v46 = vsel %vm1858_vm2, %v1853_v44, -inf }
 0x2a5   : > { %1869 = vmax.xlane.f32.xlu0 %v1868_v46  ;;  %v1855_v47 = vpop.f32.mrf.mxu1 }
 0x2a7   : > { %v4665_v48 = vpop.f32.mrf.mxu1 }
 0x2ab   : > { %v1861_v49 = vpop.xlane.xlu0 %1860 }
 0x2ac   : > { %v1871_v50 = vsub.f32 %v1715_v24, %v1861_v49  ;;  %v1023_v24 = vrot.slane %v5713_v10, %v1022_v23  ;;  %v4957_v23 = vld [vmem:[%s6433_s13 + $0x90] ss:$8 sps:$4 sm:$0xff]  }
 0x2ae   : > { %v1875_v51 = vmul.f32 1.442695, %v1871_v50  ;;  %v1629_v26 = vadd.f32 %v1628_v57, %v1023_v24  ;;  %v4924_v57 = vld [vmem:[%s6433_s13 + $0x40] ss:$8 sps:$4 sm:$0xff]  }
 0x2b0   : > { %5155 = vpow2.f32 %v1875_v51  ;;  %v1667_v5 = vpack.c.bf16 %v1629_v26, %v1629_v26  ;;  %v4915_v51 = vld [vmem:[%s6433_s13 + $0x70] ss:$8 sps:$4 sm:$0xff]  }
 0x2bd   : > { %v5156_v52 = vpop.eup %5155 }
 0x2be   : > { %v1883_v53 = vsel %vm1858_vm2, %v5156_v52, 0.0 }
 0x2bf   : > { %1884 = vadd.xlane.f32.xlu1 %v1883_v53  ;;  %v4920_v53 = vld [vmem:[%s6433_s13 + $0x64] ss:$8 sps:$4 sm:$0xff]  }
 0x31e   : > { %v1864_v63 = vpop.xlane.xlu1 %1863 }
 0x31f   : > { %v1872_v0 = vsub.f32 %v1761_v31, %v1864_v63  ;;  %v4933_v63 = vld [vmem:[%s6433_s13 + $0x10] ss:$8 sps:$4 sm:$0xff]  }
 0x321   : > { %v1877_v1 = vmul.f32 1.442695, %v1872_v0  ;;  %v4938_v0 = vld [vmem:[%s6433_s13 + $0x4] ss:$8 sps:$4 sm:$0xff]  }
 0x323   : > { %5157 = vpow2.f32 %v1877_v1  ;;  %v4936_v1 = vld [vmem:[%s6433_s13] ss:$8 sps:$4 sm:$0xff]  }
 0x326   : > { %v1867_v2 = vpop.xlane.xlu0 %1866 }
 0x327   : > { %v1873_v3 = vsub.f32 %v1807_v37, %v1867_v2  ;;  %v2004_v37 = vsel %vm1910_vm3, %v1667_v5, 0  ;;  %v4941_v2 = vld [vmem:[%s6433_s13 + $0xf4] ss:$8 sps:$4 sm:$0xff]  }
 0x329   : > { %v1879_v4 = vmul.f32 1.442695, %v1873_v3  ;;  %v4939_v3 = vld [vmem:[%s6433_s13 + $0xf0] ss:$8 sps:$4 sm:$0xff]  }
 0x32b   : > { %5159 = vpow2.f32 %v1879_v4  ;;  %v4944_v4 = vld [vmem:[%s6433_s13 + $0xe4] ss:$8 sps:$4 sm:$0xff]  }
 0x32e   : > { %v1870_v7 = vpop.xlane.xlu0 %1869 }
 0x32f   : > { %v1874_v13 = vsub.f32 %v1853_v44, %v1870_v7  ;;  %v4942_v7 = vld [vmem:[%s6433_s13 + $0xe0] ss:$8 sps:$4 sm:$0xff]  }
 0x330   : > { %v5158_v15 = vpop.eup %5157 }
 0x331   : > { %v1881_v16 = vmul.f32 1.442695, %v1874_v13  ;;  %v1886_v17 = vsel %vm1858_vm2, %v5158_v15, 0.0  ;;  %v4947_v13 = vld [vmem:[%s6433_s13 + $0xd4] ss:$8 sps:$4 sm:$0xff]  }
 0x332   : > { %1887 = vadd.xlane.f32.xlu0 %v1886_v17  ;;  %v4948_v17 = vld [vmem:[%s6433_s13 + $0xc0] ss:$8 sps:$4 sm:$0xff]  }
 0x333   : > { %5161 = vpow2.f32 %v1881_v16  ;;  %v4950_v16 = vld [vmem:[%s6433_s13 + $0xc4] ss:$8 sps:$4 sm:$0xff]  }
 0x338   : > { %v5160_v18 = vpop.eup %5159 }
 0x339   : > { %v1889_v19 = vsel %vm1858_vm2, %v5160_v18, 0.0 }
 0x33a   : > { %1890 = vadd.xlane.f32.xlu1 %v1889_v19  ;;  %v4951_v19 = vld [vmem:[%s6433_s13 + $0xb0] ss:$8 sps:$4 sm:$0xff]  }
 0x340   : > { %v5162_v20 = vpop.eup %5161 }
 0x341   : > { %v1892_v21 = vsel %vm1858_vm2, %v5162_v20, 0.0 }
 0x342   : > { %1893 = vadd.xlane.f32.xlu0 %v1892_v21  ;;  %v4954_v21 = vld [vmem:[%s6433_s13 + $0xa0] ss:$8 sps:$4 sm:$0xff]  }
 0x348   : > { %v1885_v22 = vpop.xlane.xlu1 %1884 }
 0x349   : > { %5163 = vrcp.f32 %v1885_v22  ;;  %v4959_v22 = vld [vmem:[%s6433_s13 + $0x94] ss:$8 sps:$4 sm:$0xff]  }
 0x34b   : > { %1658 = vrot.lane.b32.xlu1 %v1627_v58, %s5379_s8  ;;  %v4929_v58 = vld [vmem:[%s6433_s13 + $0x34] ss:$8 sps:$4 sm:$0xff]  }
 0x356   : > { %v5164_v25 = vpop.eup %5163 }
 0x357   : > { %v1896_v27 = vmul.f32 %v5164_v25, %v5156_v52  ;;  %v4917_v52 = vld [vmem:[%s6433_s13 + $0x74] ss:$8 sps:$4 sm:$0xff]  }
 0x358   : > { %1662 = vrot.lane.b32.xlu0 %v1629_v26, %s5379_s8  ;;  %2308 = vmatprep.subr.bf16.mxu0 %v4917_v52  ;;  %v5183_v52 = vld [vmem:[%s5631_s22] sm:$0xff] }
 0x359   : > { %v1903_v28 = vpack.c.bf16 %v1896_v27, %v1896_v27  ;;  %2309 = vmatpush1.bf16.msra.mxu0 %v4915_v51 }
 0x35a   : > { %2310 = vmatprep.subr.bf16.mxu0 %v4920_v53 }
 0x35b   : > { %4669 = vmatmul.mubr.msk.bf16.vlgmr.msra.gmra.mxu1 %vm1858_vm2, %v1903_v28  ;;  %v4962_v28 = vld [vmem:[%s6433_s13 + $0x84] ss:$8 sps:$4 sm:$0xff]  }
 0x35c   : > { %4674 = vmatprep.mubr.msk.bf16.mxu1 %vm5378_vm0, %v5377_v6 }
 0x3bb   : > { %v1888_v29 = vpop.xlane.xlu0 %1887 }
 0x3bc   : > { %5165 = vrcp.f32 %v1888_v29 }
 0x3c3   : > { %v1891_v30 = vpop.xlane.xlu1 %1890 }
 0x3c4   : > { %5167 = vrcp.f32 %v1891_v30  ;;  %v4960_v30 = vld [vmem:[%s6433_s13 + $0x80] ss:$8 sps:$4 sm:$0xff]  }
 0x3c7   : > { %v1659_v31 = vpop.permute.xlu1 %1658 }
 0x3c8   : > { %v1666_v32 = vpack.c.bf16 %v1659_v31, %v1659_v31 }
 0x3c9   : > { %v5166_v33 = vpop.eup %5165 }
 0x3ca   : > { %v1958_v10 = vsel %vm1910_vm3, %v1666_v32, 0  ;;  %v1898_v34 = vmul.f32 %v5166_v33, %v5158_v15  ;;  %v4945_v15 = vld [vmem:[%s6433_s13 + $0xd0] ss:$8 sps:$4 sm:$0xff]  }
 0x3cb   : > { %4673 = vmatpush3.bf16.msra.mxu1 %v1958_v10  ;;  %v1894_v35 = vpop.xlane.xlu0 %1893 }
 0x3cc   : > { %5169 = vrcp.f32 %v1894_v35  ;;  %v1904_v36 = vpack.c.bf16 %v1898_v34, %v1898_v34  ;;  %4678 = vmatprep.subr.bf16.mxu1 %v5377_v6 }
 0x3ce   : > { %4675 = vmatmul.mubr.msk.bf16.vlgmr.msra.gmra.mxu1 %vm1858_vm2, %v1904_v36 }
 0x3cf   : > { %4679 = vmatpush3.bf16.msra.mxu1 %v2004_v37  ;;  %v1663_v38 = vpop.permute.xlu0 %1662  ;;  %4680 = vmatprep.mubr.msk.bf16.mxu1 %vm5378_vm0, %v5377_v6 }
 0x3d0   : > { %4684 = vmatprep.subr.bf16.mxu1 %v5377_v6  ;;  %v1668_v40 = vpack.c.bf16 %v1663_v38, %v1663_v38 }
 0x3d1   : > { %v5168_v39 = vpop.eup %5167 }
 0x3d2   : > { %v1900_v41 = vmul.f32 %v5168_v39, %v5160_v18  ;;  %v2050_v43 = vsel %vm1910_vm3, %v1668_v40, 0  ;;  %v4953_v18 = vld [vmem:[%s6433_s13 + $0xb4] ss:$8 sps:$4 sm:$0xff]  }
 0x3d4   : > { %v1905_v42 = vpack.c.bf16 %v1900_v41, %v1900_v41 }
 0x3d6   : > { %4681 = vmatmul.mubr.msk.bf16.vlgmr.msra.gmra.mxu1 %vm1858_vm2, %v1905_v42 }
 0x3d7   : > { %4685 = vmatpush3.bf16.msra.mxu1 %v2050_v43  ;;  %4686 = vmatprep.mubr.msk.bf16.mxu1 %vm5378_vm0, %v5377_v6  ;;  %v4918_v6 = vld [vmem:[%s6433_s13 + $0x60] ss:$8 sps:$4 sm:$0xff]  }
 0x3d8   : > { %2311 = vmatpush1.bf16.msra.mxu0 %v4918_v6  ;;  %v5184_v6 = vld [vmem:[%s5631_s22 + $0x8] sm:$0xff] }
 0x3d9   : > { %v5170_v44 = vpop.eup %5169  ;;  %2312 = vmatprep.subr.bf16.mxu0 %v4923_v54 }
 0x3da   : > { %v1902_v45 = vmul.f32 %v5170_v44, %v5162_v20  ;;  %v4956_v20 = vld [vmem:[%s6433_s13 + $0xa4] ss:$8 sps:$4 sm:$0xff]   ;;  %v2136_v44 = vld [vmem:[%s6434_s23] sm:$0x3] }
 0x3dc   : > { %v1906_v46 = vpack.c.bf16 %v1902_v45, %v1902_v45  ;;  %2313 = vmatpush1.bf16.msra.mxu0 %v4921_v55  ;;  %v2141_v45 = vrot.slane %v2136_v44, %v5716_v11 }
 0x3dd   : > { %2314 = vmatprep.subr.bf16.mxu0 %v4926_v56 }
 0x3de   : > { %4687 = vmatmul.mubr.msk.bf16.vlgmr.msra.gmra.mxu1 %vm1858_vm2, %v1906_v46  ;;  %v2145_v46 = vrot.slane %v2136_v44, %v5723_v14 }
 0x3e0   : > { %2315 = vmatpush1.bf16.msra.mxu0 %v4924_v57  ;;  %v4963_v57 = vld [vmem:[%s5602_s17 + $0xe0] ss:$16 sps:$4 sm:$0xff]  }
 0x3e1   : > { %2316 = vmatprep.subr.bf16.mxu0 %v4929_v58  ;;  %v4965_v58 = vld [vmem:[%s5602_s17 + $0xe4] ss:$16 sps:$4 sm:$0xff]  }
 0x3e2   : > { %2804 = vmatprep.subr.bf16.mxu1 %v4965_v58  ;;  %v5046_v58 = vld [vmem:[%s5602_s17 + $0x14c] ss:$16 sps:$4 sm:$0xff]  }
 0x3e3   : > { %2805 = vmatpush1.bf16.msra.mxu1 %v4963_v57  ;;  %v5043_v57 = vld [vmem:[%s5602_s17 + $0x144] ss:$16 sps:$4 sm:$0xff]  }
 0x3e4   : > { %2317 = vmatpush1.bf16.msra.mxu0 %v4927_v59  ;;  %v4966_v59 = vld [vmem:[%s5602_s17 + $0xe8] ss:$16 sps:$4 sm:$0xff]  }
 0x3e5   : > { %2318 = vmatprep.subr.bf16.mxu0 %v4932_v60  ;;  %v4968_v60 = vld [vmem:[%s5602_s17 + $0xec] ss:$16 sps:$4 sm:$0xff]  }
 0x3e8   : > { %2319 = vmatpush1.bf16.msra.mxu0 %v4930_v61  ;;  %v4971_v61 = vld [vmem:[%s5602_s17 + $0xc4] ss:$16 sps:$4 sm:$0xff]  }
 0x3e9   : > { %2320 = vmatprep.subr.bf16.mxu0 %v4935_v62  ;;  %v4974_v62 = vld [vmem:[%s5602_s17 + $0xcc] ss:$16 sps:$4 sm:$0xff]   ;;  %2806 = vmatprep.subr.bf16.mxu1 %v4971_v61  ;;  %v5049_v61 = vld [vmem:[%s5602_s17 + $0x124] ss:$16 sps:$4 sm:$0xff]  }
 0x3ec   : > { %2321 = vmatpush1.bf16.msra.mxu0 %v4933_v63  ;;  %v4969_v63 = vld [vmem:[%s5602_s17 + $0xc0] ss:$16 sps:$4 sm:$0xff]  }
 0x3ed   : > { %2322 = vmatprep.subr.bf16.mxu0 %v4938_v0  ;;  %v4972_v0 = vld [vmem:[%s5602_s17 + $0xc8] ss:$16 sps:$4 sm:$0xff]   ;;  %2807 = vmatpush1.bf16.msra.mxu1 %v4969_v63  ;;  %v5047_v63 = vld [vmem:[%s5602_s17 + $0x120] ss:$16 sps:$4 sm:$0xff]  }
 0x3f0   : > { %2323 = vmatpush1.bf16.msra.mxu0 %v4936_v1  ;;  %v4977_v1 = vld [vmem:[%s5602_s17 + $0xa4] ss:$16 sps:$4 sm:$0xff]  }
 0x3f1   : > { %2324 = vmatprep.subr.bf16.mxu0 %v4941_v2  ;;  %v4980_v2 = vld [vmem:[%s5602_s17 + $0xac] ss:$16 sps:$4 sm:$0xff]   ;;  %2808 = vmatprep.subr.bf16.mxu1 %v4977_v1  ;;  %v5055_v1 = vld [vmem:[%s5602_s17 + $0x104] ss:$16 sps:$4 sm:$0xff]  }
 0x3f4   : > { %2325 = vmatpush2.bf16.msra.mxu0 %v4939_v3  ;;  %v4975_v3 = vld [vmem:[%s5602_s17 + $0xa0] ss:$16 sps:$4 sm:$0xff]  }
 0x3f5   : > { %2326 = vmatprep.subr.bf16.mxu0 %v4944_v4  ;;  %v4978_v4 = vld [vmem:[%s5602_s17 + $0xa8] ss:$16 sps:$4 sm:$0xff]   ;;  %2809 = vmatpush1.bf16.msra.mxu1 %v4975_v3  ;;  %v5053_v3 = vld [vmem:[%s5602_s17 + $0x100] ss:$16 sps:$4 sm:$0xff]  }
 0x3f8   : > { %2327 = vmatpush2.bf16.msra.mxu0 %v4942_v7  ;;  %v4983_v7 = vld [vmem:[%s5602_s17 + $0x84] ss:$16 sps:$4 sm:$0xff]  }
 0x3f9   : > { %2328 = vmatprep.subr.bf16.mxu0 %v4947_v13  ;;  %v4986_v13 = vld [vmem:[%s5602_s17 + $0x8c] ss:$16 sps:$4 sm:$0xff]   ;;  %2810 = vmatprep.subr.bf16.mxu1 %v4983_v7 }
 0x3fa   : > { %v5061_v7 = vld [vmem:[%s5612_s24 + $0x74] ss:$8 sps:$4 sm:$0xff]  }
 0x3fc   : > { %2329 = vmatpush2.bf16.msra.mxu0 %v4945_v15  ;;  %v4981_v15 = vld [vmem:[%s5602_s17 + $0x80] ss:$16 sps:$4 sm:$0xff]  }
 0x3fd   : > { %2330 = vmatprep.subr.bf16.mxu0 %v4950_v16  ;;  %v4984_v16 = vld [vmem:[%s5602_s17 + $0x88] ss:$16 sps:$4 sm:$0xff]   ;;  %2811 = vmatpush1.bf16.msra.mxu1 %v4981_v15 }
 0x400   : > { %2331 = vmatpush2.bf16.msra.mxu0 %v4948_v17  ;;  %v4989_v17 = vld [vmem:[%s5602_s17 + $0x64] ss:$16 sps:$4 sm:$0xff]  }
 0x401   : > { %2332 = vmatprep.subr.bf16.mxu0 %v4953_v18  ;;  %v4992_v18 = vld [vmem:[%s5602_s17 + $0x6c] ss:$16 sps:$4 sm:$0xff]   ;;  %2812 = vmatprep.subr.bf16.mxu1 %v4989_v17 }
 0x404   : > { %2333 = vmatpush2.bf16.msra.mxu0 %v4951_v19  ;;  %v4987_v19 = vld [vmem:[%s5602_s17 + $0x60] ss:$16 sps:$4 sm:$0xff]  }
 0x405   : > { %2334 = vmatprep.subr.bf16.mxu0 %v4956_v20  ;;  %v4990_v20 = vld [vmem:[%s5602_s17 + $0x68] ss:$16 sps:$4 sm:$0xff]   ;;  %2813 = vmatpush1.bf16.msra.mxu1 %v4987_v19  ;;  %v2352_v19 = vld [vmem:[%s6437_s0] sm:$0x3] }
 0x408   : > { %2335 = vmatpush2.bf16.msra.mxu0 %v4954_v21  ;;  %v4995_v21 = vld [vmem:[%s5602_s17 + $0x44] ss:$16 sps:$4 sm:$0xff]  }
 0x409   : > { %2336 = vmatprep.subr.bf16.mxu0 %v4959_v22  ;;  %v4998_v22 = vld [vmem:[%s5602_s17 + $0x4c] ss:$16 sps:$4 sm:$0xff]   ;;  %2814 = vmatprep.subr.bf16.mxu1 %v4995_v21 }
 0x40c   : > { %2337 = vmatpush2.bf16.msra.mxu0 %v4957_v23  ;;  %v4993_v23 = vld [vmem:[%s5602_s17 + $0x40] ss:$16 sps:$4 sm:$0xff]  }
 0x40d   : > { %2338 = vmatprep.subr.bf16.mxu0 %v4962_v28  ;;  %2815 = vmatpush1.bf16.msra.mxu1 %v4993_v23  ;;  %v5002_v28 = vld [vmem:[%s5602_s17 + $0x28] ss:$16 sps:$4 sm:$0xff]  }
 0x410   : > { %2339 = vmatpush2.bf16.msra.mxu0 %v4960_v30  ;;  %v5010_v30 = vld [vmem:[%s5602_s17 + $0xc] ss:$16 sps:$4 sm:$0xff]  }
 0x411   : > { %2845 = vmatprep.subr.bf16.mxu0 %v4968_v60  ;;  %v5044_v60 = vld [vmem:[%s5602_s17 + $0x148] ss:$16 sps:$4 sm:$0xff]  }
 0x41b   : > { %v5834_v47 = vpop.f32.mrf.mxu1 }
 0x41d   : > { %v4670_v48 = vpop.f32.mrf.mxu1 }
 0x41f   : > { %v1951_v49 = vpop.f32.mrf.mxu1 }
 0x421   : > { %v4671_v50 = vpop.f32.mrf.mxu1 }
 0x48e   : > { %v1994_v24 = vpop.f32.mrf.mxu1 }
 0x490   : > { %v4676_v25 = vpop.f32.mrf.mxu1 }
 0x491   : > { %v5001_v25 = vld [vmem:[%s5602_s17 + $0x24] ss:$16 sps:$4 sm:$0xff]  }
 0x492   : > { %v1997_v26 = vpop.f32.mrf.mxu1  ;;  %2816 = vmatprep.subr.bf16.mxu1 %v5001_v25  ;;  %v2391_v25 = vrot.slane %v2352_v19, %v5723_v14 }
 0x493   : > { %v5004_v26 = vld [vmem:[%s5602_s17 + $0x2c] ss:$16 sps:$4 sm:$0xff]  }
 0x494   : > { %v4677_v27 = vpop.f32.mrf.mxu1 }
 0x495   : > { %v4999_v27 = vld [vmem:[%s5602_s17 + $0x20] ss:$16 sps:$4 sm:$0xff]  }
 0x496   : > { %v2040_v29 = vpop.f32.mrf.mxu1  ;;  %2817 = vmatpush1.bf16.msra.mxu1 %v4999_v27 }
 0x498   : > { %v4682_v31 = vpop.f32.mrf.mxu1 }
 0x499   : > { %v5005_v31 = vld [vmem:[%s5602_s17] ss:$16 sps:$4 sm:$0xff]  }
 0x49a   : > { %v2043_v32 = vpop.f32.mrf.mxu1 }
 0x49b   : > { %v5008_v32 = vld [vmem:[%s5602_s17 + $0x8] ss:$16 sps:$4 sm:$0xff]  }
 0x49c   : > { %v4683_v33 = vpop.f32.mrf.mxu1 }
 0x49d   : > { %v5013_v33 = vld [vmem:[%s5602_s17 + $0x1e4] ss:$16 sps:$4 sm:$0xff]  }
 0x49e   : > { %v2086_v5 = vpop.f32.mrf.mxu1 }
 0x49f   : > { %v4766_v10 = vpack.i.bf16 %v1994_v24, %v2086_v5  ;;  %v4996_v24 = vld [vmem:[%s5602_s17 + $0x48] ss:$16 sps:$4 sm:$0xff]   ;;  %v5016_v5 = vld [vmem:[%s5602_s17 + $0x1ec] ss:$16 sps:$4 sm:$0xff]  }
 0x4a0   : > { %v4688_v34 = vpop.f32.mrf.mxu1 }
 0x4a1   : > { %4767 = vrot.lane.b32.xlu1 %v4766_v10, %s5379_s8  ;;  %v5011_v10 = vld [vmem:[%s5602_s17 + $0x1e0] ss:$16 sps:$4 sm:$0xff]   ;;  %v5014_v34 = vld [vmem:[%s5602_s17 + $0x1e8] ss:$16 sps:$4 sm:$0xff]  }
 0x4a2   : > { %v2089_v35 = vpop.f32.mrf.mxu1 }
 0x4a3   : > { %v5019_v35 = vld [vmem:[%s5602_s17 + $0x1c4] ss:$16 sps:$4 sm:$0xff]  }
 0x4a4   : > { %v4689_v36 = vpop.f32.mrf.mxu1 }
 0x4a5   : > { %v5022_v36 = vld [vmem:[%s5602_s17 + $0x1cc] ss:$16 sps:$4 sm:$0xff]  }
 0x513   : > { %v4768_v37 = vpop.permute.xlu1 %4767 }
 0x514   : > { %v4770_v38 = vunpack.i.h.bf16 %v4768_v37  ;;  %v4769_v39 = vunpack.i.l.bf16 %v4768_v37  ;;  %v5017_v37 = vld [vmem:[%s5602_s17 + $0x1c0] ss:$16 sps:$4 sm:$0xff]  }
 0x516   : > { %v2100_v40 = vsel %vm1673_vm1, %v5834_v47, %v4770_v38  ;;  %v2101_v41 = vsel %vm1673_vm1, %v2040_v29, %v4769_v39  ;;  %v5007_v29 = vld [vmem:[%s5602_s17 + $0x4] ss:$16 sps:$4 sm:$0xff]   ;;  %v5020_v38 = vld [vmem:[%s5602_s17 + $0x1c8] ss:$16 sps:$4 sm:$0xff]  }
 0x517   : > { %v2102_v42 = vpack.c.bf16 %v2100_v40, %v2100_v40  ;;  %v2103_v43 = vpack.c.bf16 %v2101_v41, %v2101_v41  ;;  %2818 = vmatprep.subr.bf16.mxu1 %v5007_v29 }
 0x518   : > { %2819 = vmatpush1.bf16.msra.mxu1 %v5005_v31 }
 0x519   : > { %2340 = vmatprep.mubr.bf16.mxu0 %v2103_v43  ;;  %2820 = vmatprep.subr.bf16.mxu1 %v5013_v33  ;;  %v5059_v33 = vld [vmem:[%s5612_s24 + $0x70] ss:$8 sps:$4 sm:$0xff]  }
 0x51a   : > { %2341 = vmatmul.mubr.bf16.vlgmr.msra.gmra.mxu0 %v2102_v42 }
 0x51b   : > { %2846 = vmatpush1.bf16.msra.mxu0 %v4966_v59  ;;  %v5041_v59 = vld [vmem:[%s5602_s17 + $0x140] ss:$16 sps:$4 sm:$0xff]  }
 0x51c   : > { %2847 = vmatprep.subr.bf16.mxu0 %v4974_v62  ;;  %2821 = vmatpush2.bf16.msra.mxu1 %v5011_v10  ;;  %v5052_v62 = vld [vmem:[%s5602_s17 + $0x12c] ss:$16 sps:$4 sm:$0xff]  }
 0x51d   : > { %2822 = vmatprep.subr.bf16.mxu1 %v5019_v35  ;;  %v5067_v10 = vld [vmem:[%s5612_s24 + $0x64] ss:$8 sps:$4 sm:$0xff]   ;;  %v5065_v35 = vld [vmem:[%s5612_s24 + $0x60] ss:$8 sps:$4 sm:$0xff]  }
 0x51f   : > { %2848 = vmatpush1.bf16.msra.mxu0 %v4972_v0  ;;  %v5050_v0 = vld [vmem:[%s5602_s17 + $0x128] ss:$16 sps:$4 sm:$0xff]  }
 0x520   : > { %2849 = vmatprep.subr.bf16.mxu0 %v4980_v2  ;;  %2823 = vmatpush2.bf16.msra.mxu1 %v5017_v37  ;;  %v5058_v2 = vld [vmem:[%s5602_s17 + $0x10c] ss:$16 sps:$4 sm:$0xff]  }
 0x521   : > { %v5073_v37 = vld [vmem:[%s5612_s24 + $0x54] ss:$8 sps:$4 sm:$0xff]  }
 0x523   : > { %2850 = vmatpush1.bf16.msra.mxu0 %v4978_v4  ;;  %v5056_v4 = vld [vmem:[%s5602_s17 + $0x108] ss:$16 sps:$4 sm:$0xff]  }
 0x524   : > { %2851 = vmatprep.subr.bf16.mxu0 %v4986_v13  ;;  %v5064_v13 = vld [vmem:[%s5612_s24 + $0x174] ss:$8 sps:$4 sm:$0xff]  }
 0x527   : > { %2852 = vmatpush1.bf16.msra.mxu0 %v4984_v16 }
 0x528   : > { %2853 = vmatprep.subr.bf16.mxu0 %v4992_v18  ;;  %v2351_v18 = vld [vmem:[%s6435_s16] sm:$0x3] }
 0x529   : > { %v2378_v21 = vrot.slane %v2351_v18, %v5723_v14 }
 0x52b   : > { %2854 = vmatpush1.bf16.msra.mxu0 %v4990_v20  ;;  %v2374_v20 = vrot.slane %v2351_v18, %v5716_v11  ;;  %v5128_v18 = vld [vmem:[%s5612_s24 + $0x1c0] ss:$8 sps:$4 sm:$0xff]  }
 0x52c   : > { %2855 = vmatprep.subr.bf16.mxu0 %v4998_v22 }
 0x52f   : > { %2856 = vmatpush1.bf16.msra.mxu0 %v4996_v24  ;;  %v2387_v24 = vrot.slane %v2352_v19, %v5716_v11  ;;  %v5130_v19 = vld [vmem:[%s5612_s24 + $0x1c4] ss:$8 sps:$4 sm:$0xff]  }
 0x530   : > { %2857 = vmatprep.subr.bf16.mxu0 %v5004_v26 }
 0x533   : > { %2858 = vmatpush1.bf16.msra.mxu0 %v5002_v28 }
 0x534   : > { %2859 = vmatprep.subr.bf16.mxu0 %v5010_v30 }
 0x537   : > { %2860 = vmatpush1.bf16.msra.mxu0 %v5008_v32 }
 0x538   : > { %2861 = vmatprep.subr.bf16.mxu0 %v5016_v5  ;;  %v5062_v5 = vld [vmem:[%s5612_s24 + $0x170] ss:$8 sps:$4 sm:$0xff]  }
 0x53b   : > { %2862 = vmatpush2.bf16.msra.mxu0 %v5014_v34  ;;  %v5070_v34 = vld [vmem:[%s5612_s24 + $0x164] ss:$8 sps:$4 sm:$0xff]  }
 0x53c   : > { %2863 = vmatprep.subr.bf16.mxu0 %v5022_v36  ;;  %v5068_v36 = vld [vmem:[%s5612_s24 + $0x160] ss:$8 sps:$4 sm:$0xff]  }
 0x53f   : > { %2864 = vmatpush2.bf16.msra.mxu0 %v5020_v38  ;;  %v5076_v38 = vld [vmem:[%s5612_s24 + $0x154] ss:$8 sps:$4 sm:$0xff]  }
 0x5da   : > { %v2342_v47 = vpop.f32.mrf.mxu0 }
 0x5db   : > { %v2343_v48 = vadd.f32 %v2342_v47, %v2141_v45  ;;  %v5028_v47 = vld [vmem:[%s5602_s17 + $0x1ac] ss:$16 sps:$4 sm:$0xff]  }
 0x5dc   : > { %v2344_v49 = vpop.f32.mrf.mxu0  ;;  %2865 = vmatprep.subr.bf16.mxu0 %v5028_v47  ;;  %v5083_v47 = vld [vmem:[%s5612_s24 + $0x30] ss:$8 sps:$4 sm:$0xff]  }
 0x5dd   : > { %v2345_v50 = vadd.f32 %v2344_v49, %v2145_v46  ;;  %v5880_v53 = vadd.f32 %v5183_v52, %v2343_v48  ;;  %v5025_v46 = vld [vmem:[%s5602_s17 + $0x1a4] ss:$16 sps:$4 sm:$0xff]   ;;  %v5023_v48 = vld [vmem:[%s5602_s17 + $0x1a0] ss:$16 sps:$4 sm:$0xff]   ;;  %v5026_v49 = vld [vmem:[%s5602_s17 + $0x1a8] ss:$16 sps:$4 sm:$0xff]  }
 0x5de   : > { %v2346_v51 = vpop.f32.mrf.mxu0  ;;  %2824 = vmatprep.subr.bf16.mxu1 %v5025_v46  ;;  %2866 = vmatpush2.bf16.msra.mxu0 %v5026_v49  ;;  %v5032_v52 = vld [vmem:[%s5602_s17 + $0x188] ss:$16 sps:$4 sm:$0xff]   ;;  %v5088_v46 = vld [vmem:[%s5612_s24 + $0x134] ss:$8 sps:$4 sm:$0xff]   ;;  %v5091_v49 = vld [vmem:[%s5612_s24 + $0x24] ss:$8 sps:$4 sm:$0xff]  }
 0x5df   : > { %v5883_v54 = vadd.f32 %v5184_v6, %v2345_v50  ;;  %v5031_v50 = vld [vmem:[%s5602_s17 + $0x184] ss:$16 sps:$4 sm:$0xff]   ;;  %2825 = vmatpush2.bf16.msra.mxu1 %v5023_v48  ;;  %v5029_v51 = vld [vmem:[%s5602_s17 + $0x180] ss:$16 sps:$4 sm:$0xff]  }
 0x5e0   : > { %v2347_v55 = vpop.f32.mrf.mxu0  ;;  %2826 = vmatprep.subr.bf16.mxu1 %v5031_v50  ;;  %v5037_v6 = vld [vmem:[%s5602_s17 + $0x164] ss:$16 sps:$4 sm:$0xff]   ;;  %v5086_v48 = vld [vmem:[%s5612_s24 + $0x130] ss:$8 sps:$4 sm:$0xff]  }
 0x5e1   : > { %v2353_v56 = vadd.f32 %v5883_v54, %v5880_v53  ;;  %v5035_v55 = vld [vmem:[%s5602_s17 + $0x160] ss:$16 sps:$4 sm:$0xff]   ;;  %v5094_v50 = vld [vmem:[%s5612_s24 + $0x124] ss:$8 sps:$4 sm:$0xff]  }
 0x5e3   : > { %2354 = vadd.xlane.f32.xlu1 %v2353_v56  ;;  %2827 = vmatpush2.bf16.msra.mxu1 %v5029_v51  ;;  %v5038_v56 = vld [vmem:[%s5602_s17 + $0x168] ss:$16 sps:$4 sm:$0xff]  }
 0x5e4   : > { %2828 = vmatprep.subr.bf16.mxu1 %v5037_v6  ;;  %v5089_v51 = vld [vmem:[%s5612_s24 + $0x20] ss:$8 sps:$4 sm:$0xff]   ;;  %v5100_v6 = vld [vmem:[%s5612_s24 + $0x114] ss:$8 sps:$4 sm:$0xff]  }
 0x5e7   : > { %2829 = vmatpush2.bf16.msra.mxu1 %v5035_v55  ;;  %v5098_v55 = vld [vmem:[%s5612_s24 + $0x110] ss:$8 sps:$4 sm:$0xff]  }
 0x5e8   : > { %2830 = vmatprep.subr.bf16.mxu1 %v5043_v57  ;;  %v5106_v57 = vld [vmem:[%s5612_s24 + $0x104] ss:$8 sps:$4 sm:$0xff]  }
 0x5eb   : > { %2831 = vmatpush2.bf16.msra.mxu1 %v5041_v59  ;;  %v5104_v59 = vld [vmem:[%s5612_s24 + $0x100] ss:$8 sps:$4 sm:$0xff]  }
 0x5ec   : > { %2832 = vmatprep.subr.bf16.mxu1 %v5049_v61  ;;  %v5112_v61 = vld [vmem:[%s5612_s24 + $0x1f4] ss:$8 sps:$4 sm:$0xff]  }
 0x5ef   : > { %2833 = vmatpush2.bf16.msra.mxu1 %v5047_v63  ;;  %v5110_v63 = vld [vmem:[%s5612_s24 + $0x1f0] ss:$8 sps:$4 sm:$0xff]  }
 0x5f0   : > { %2834 = vmatprep.subr.bf16.mxu1 %v5055_v1  ;;  %v5118_v1 = vld [vmem:[%s5612_s24 + $0x1e4] ss:$8 sps:$4 sm:$0xff]  }
 0x5f3   : > { %2835 = vmatpush2.bf16.msra.mxu1 %v5053_v3  ;;  %v5116_v3 = vld [vmem:[%s5612_s24 + $0x1e0] ss:$8 sps:$4 sm:$0xff]  }
 0x5f4   : > { %3322 = vmatprep.subr.bf16.mxu1 %v5061_v7  ;;  %v5124_v7 = vld [vmem:[%s5612_s24 + $0x1d4] ss:$8 sps:$4 sm:$0xff]  }
 0x66c   : > { %v2355_v39 = vpop.xlane.xlu1 %2354 }
 0x66d   : > { %v2357_v40 = vmul.f32 0.00390625, %v2355_v39  ;;  %v5071_v39 = vld [vmem:[%s5612_s24 + $0x50] ss:$8 sps:$4 sm:$0xff]  }
 0x66f   : > { %v5928_v41 = vsub.f32 %v5880_v53, %v2357_v40  ;;  %v5931_v42 = vsub.f32 %v5883_v54, %v2357_v40  ;;  %v5034_v53 = vld [vmem:[%s5602_s17 + $0x18c] ss:$16 sps:$4 sm:$0xff]   ;;  %v5074_v40 = vld [vmem:[%s5612_s24 + $0x150] ss:$8 sps:$4 sm:$0xff]  }
 0x670   : > { %v5040_v54 = vld [vmem:[%s5602_s17 + $0x16c] ss:$16 sps:$4 sm:$0xff]   ;;  %2867 = vmatprep.subr.bf16.mxu0 %v5034_v53 }
 0x671   : > { %v2360_v43 = vmul.f32 %v5928_v41, %v5928_v41  ;;  %v2361_v44 = vmul.f32 %v5931_v42, %v5931_v42  ;;  %2868 = vmatpush2.bf16.msra.mxu0 %v5032_v52  ;;  %v5092_v52 = vld [vmem:[%s5612_s24 + $0x120] ss:$8 sps:$4 sm:$0xff]   ;;  %v5097_v53 = vld [vmem:[%s5612_s24 + $0x14] ss:$8 sps:$4 sm:$0xff]  }
 0x672   : > { %2869 = vmatprep.subr.bf16.mxu0 %v5040_v54  ;;  %v5095_v54 = vld [vmem:[%s5612_s24 + $0x10] ss:$8 sps:$4 sm:$0xff]  }
 0x673   : > { %v2362_v45 = vadd.f32 %v2361_v44, %v2360_v43  ;;  %v5077_v43 = vld [vmem:[%s5612_s24 + $0x40] ss:$8 sps:$4 sm:$0xff]  }
 0x674   : > { %v5080_v44 = vld [vmem:[%s5612_s24 + $0x140] ss:$8 sps:$4 sm:$0xff]  }
 0x675   : > { %2363 = vadd.xlane.f32.xlu0 %v2362_v45  ;;  %2870 = vmatpush2.bf16.msra.mxu0 %v5038_v56  ;;  %v5085_v45 = vld [vmem:[%s5612_s24 + $0x34] ss:$8 sps:$4 sm:$0xff]   ;;  %v5103_v56 = vld [vmem:[%s5612_s24 + $0x4] ss:$8 sps:$4 sm:$0xff]  }
 0x676   : > { %2871 = vmatprep.subr.bf16.mxu0 %v5046_v58  ;;  %v5101_v58 = vld [vmem:[%s5612_s24] ss:$8 sps:$4 sm:$0xff]  }
 0x679   : > { %2872 = vmatpush2.bf16.msra.mxu0 %v5044_v60  ;;  %v5109_v60 = vld [vmem:[%s5612_s24 + $0xf4] ss:$8 sps:$4 sm:$0xff]  }
 0x67a   : > { %2873 = vmatprep.subr.bf16.mxu0 %v5052_v62  ;;  %v5107_v62 = vld [vmem:[%s5612_s24 + $0xf0] ss:$8 sps:$4 sm:$0xff]  }
 0x67d   : > { %2874 = vmatpush2.bf16.msra.mxu0 %v5050_v0  ;;  %v5115_v0 = vld [vmem:[%s5612_s24 + $0xe4] ss:$8 sps:$4 sm:$0xff]  }
 0x67e   : > { %2875 = vmatprep.subr.bf16.mxu0 %v5058_v2  ;;  %v5113_v2 = vld [vmem:[%s5612_s24 + $0xe0] ss:$8 sps:$4 sm:$0xff]  }
 0x681   : > { %2876 = vmatpush2.bf16.msra.mxu0 %v5056_v4  ;;  %v5121_v4 = vld [vmem:[%s5612_s24 + $0xd4] ss:$8 sps:$4 sm:$0xff]  }
 0x682   : > { %3363 = vmatprep.subr.bf16.mxu0 %v5064_v13  ;;  %v5119_v13 = vld [vmem:[%s5612_s24 + $0xd0] ss:$8 sps:$4 sm:$0xff]  }
 0x6fe   : > { %v2364_v15 = vpop.xlane.xlu0 %2363 }
 0x6ff   : > { %v2365_v16 = vmul.f32 0.00390625, %v2364_v15  ;;  %v5122_v15 = vld [vmem:[%s5612_s24 + $0x1d0] ss:$8 sps:$4 sm:$0xff]  }
 0x701   : > { %v2366_v17 = vadd.f32 1e-06, %v2365_v16  ;;  %v5125_v16 = vld [vmem:[%s5612_s24 + $0xc0] ss:$8 sps:$4 sm:$0xff]  }
 0x703   : > { %5171 = vrsqrt.f32 %v2366_v17  ;;  %v5127_v17 = vld [vmem:[%s5612_s24 + $0xc4] ss:$8 sps:$4 sm:$0xff]  }
 0x710   : > { %v5172_v22 = vpop.eup %5171 }
 0x711   : > { %v2369_v23 = vmul.f32 %v5172_v22, %v5931_v42  ;;  %v2368_v26 = vmul.f32 %v5172_v22, %v5928_v41  ;;  %v5079_v41 = vld [vmem:[%s5612_s24 + $0x44] ss:$8 sps:$4 sm:$0xff]   ;;  %v5131_v22 = vld [vmem:[%s5612_s24 + $0xb0] ss:$8 sps:$4 sm:$0xff]  }
 0x712   : > { %v5082_v42 = vld [vmem:[%s5612_s24 + $0x144] ss:$8 sps:$4 sm:$0xff]  }
 0x713   : > { %v2382_v27 = vmul.f32 %v2378_v21, %v2369_v23  ;;  %v2381_v28 = vmul.f32 %v2374_v20, %v2368_v26  ;;  %v5133_v20 = vld [vmem:[%s5612_s24 + $0xb4] ss:$8 sps:$4 sm:$0xff]   ;;  %v5134_v23 = vld [vmem:[%s5612_s24 + $0x1b0] ss:$8 sps:$4 sm:$0xff]   ;;  %v5137_v26 = vld [vmem:[%s5612_s24 + $0xa0] ss:$8 sps:$4 sm:$0xff]  }
 0x714   : > { %v5136_v21 = vld [vmem:[%s5612_s24 + $0x1b4] ss:$8 sps:$4 sm:$0xff]  }
 0x715   : > { %v5979_v29 = vadd.f32 %v2391_v25, %v2382_v27  ;;  %v5981_v30 = vadd.f32 %v2387_v24, %v2381_v28  ;;  %v5139_v24 = vld [vmem:[%s5612_s24 + $0xa4] ss:$8 sps:$4 sm:$0xff]   ;;  %v5140_v27 = vld [vmem:[%s5612_s24 + $0x1a0] ss:$8 sps:$4 sm:$0xff]   ;;  %v5145_v28 = vld [vmem:[%s5612_s24 + $0x94] ss:$8 sps:$4 sm:$0xff]  }
 0x716   : > { %v5142_v25 = vld [vmem:[%s5612_s24 + $0x1a4] ss:$8 sps:$4 sm:$0xff]  }
 0x717   : > { %v2397_v31 = vpack.c.bf16 %v5979_v29, %v5979_v29  ;;  %v2396_v32 = vpack.c.bf16 %v5981_v30, %v5981_v30 }
 0x719   : > { %2836 = vmatprep.mubr.bf16.mxu1 %v2397_v31  ;;  %2877 = vmatprep.mubr.bf16.mxu0 %v2397_v31  ;;  %v5148_v31 = vld [vmem:[%s5612_s24 + $0x194] ss:$8 sps:$4 sm:$0xff]  }
 0x71a   : > { %2837 = vmatmul.mubr.bf16.vlgmr.msra.gmra.mxu1 %v2396_v32  ;;  %2878 = vmatmul.mubr.bf16.vlgmr.msra.gmra.mxu0 %v2396_v32  ;;  %v5143_v32 = vld [vmem:[%s5612_s24 + $0x90] ss:$8 sps:$4 sm:$0xff]  }
 0x71b   : > { %3323 = vmatpush1.bf16.msra.mxu1 %v5059_v33  ;;  %3364 = vmatpush1.bf16.msra.mxu0 %v5062_v5  ;;  %v5146_v33 = vld [vmem:[%s5612_s24 + $0x190] ss:$8 sps:$4 sm:$0xff]   ;;  %v5151_v5 = vld [vmem:[%s5612_s24 + $0x84] ss:$8 sps:$4 sm:$0xff]  }
 0x71c   : > { %3324 = vmatprep.subr.bf16.mxu1 %v5067_v10  ;;  %3365 = vmatprep.subr.bf16.mxu0 %v5070_v34  ;;  %v5154_v10 = vld [vmem:[%s5612_s24 + $0x184] ss:$8 sps:$4 sm:$0xff]   ;;  %v5149_v34 = vld [vmem:[%s5612_s24 + $0x80] ss:$8 sps:$4 sm:$0xff]  }
 0x71f   : > { %3325 = vmatpush1.bf16.msra.mxu1 %v5065_v35  ;;  %3366 = vmatpush1.bf16.msra.mxu0 %v5068_v36  ;;  %v5152_v35 = vld [vmem:[%s5612_s24 + $0x180] ss:$8 sps:$4 sm:$0xff]  }
 0x720   : > { %3326 = vmatprep.subr.bf16.mxu1 %v5073_v37  ;;  %3367 = vmatprep.subr.bf16.mxu0 %v5076_v38  ;;  %v2462_v36 = vld [vmem:[%s5607_s14] sm:$0xf] }
 0x721   : > { %v2467_v37 = vrot.slane %v2462_v36, %v5716_v11  ;;  %v2475_v38 = vrot.slane %v2462_v36, %v1010_v9 }
 0x723   : > { %3327 = vmatpush1.bf16.msra.mxu1 %v5071_v39  ;;  %3368 = vmatpush1.bf16.msra.mxu0 %v5074_v40  ;;  %v2471_v39 = vrot.slane %v2462_v36, %v5723_v14  ;;  %v2479_v40 = vrot.slane %v2462_v36, %v1014_v12 }
 0x724   : > { %3328 = vmatprep.subr.bf16.mxu1 %v5079_v41  ;;  %3369 = vmatprep.subr.bf16.mxu0 %v5082_v42 }
 0x727   : > { %3329 = vmatpush1.bf16.msra.mxu1 %v5077_v43  ;;  %3370 = vmatpush1.bf16.msra.mxu0 %v5080_v44 }
 0x728   : > { %3330 = vmatprep.subr.bf16.mxu1 %v5085_v45  ;;  %3371 = vmatprep.subr.bf16.mxu0 %v5088_v46 }
 0x72b   : > { %3331 = vmatpush1.bf16.msra.mxu1 %v5083_v47  ;;  %3372 = vmatpush1.bf16.msra.mxu0 %v5086_v48 }
 0x72c   : > { %3332 = vmatprep.subr.bf16.mxu1 %v5091_v49  ;;  %3373 = vmatprep.subr.bf16.mxu0 %v5094_v50 }
 0x72f   : > { %3333 = vmatpush1.bf16.msra.mxu1 %v5089_v51  ;;  %3374 = vmatpush1.bf16.msra.mxu0 %v5092_v52 }
 0x730   : > { %3334 = vmatprep.subr.bf16.mxu1 %v5097_v53  ;;  %3375 = vmatprep.subr.bf16.mxu0 %v5100_v6 }
 0x733   : > { %3335 = vmatpush1.bf16.msra.mxu1 %v5095_v54  ;;  %3376 = vmatpush1.bf16.msra.mxu0 %v5098_v55 }
 0x734   : > { %3336 = vmatprep.subr.bf16.mxu1 %v5103_v56  ;;  %3377 = vmatprep.subr.bf16.mxu0 %v5106_v57 }
 0x737   : > { %3337 = vmatpush1.bf16.msra.mxu1 %v5101_v58  ;;  %3378 = vmatpush1.bf16.msra.mxu0 %v5104_v59 }
 0x738   : > { %3338 = vmatprep.subr.bf16.mxu1 %v5109_v60  ;;  %3379 = vmatprep.subr.bf16.mxu0 %v5112_v61 }
 0x73b   : > { %3339 = vmatpush2.bf16.msra.mxu1 %v5107_v62  ;;  %3380 = vmatpush2.bf16.msra.mxu0 %v5110_v63 }
 0x73c   : > { %3340 = vmatprep.subr.bf16.mxu1 %v5115_v0  ;;  %3381 = vmatprep.subr.bf16.mxu0 %v5118_v1 }
 0x73f   : > { %3341 = vmatpush2.bf16.msra.mxu1 %v5113_v2  ;;  %3382 = vmatpush2.bf16.msra.mxu0 %v5116_v3 }
 0x740   : > { %3342 = vmatprep.subr.bf16.mxu1 %v5121_v4  ;;  %3383 = vmatprep.subr.bf16.mxu0 %v5124_v7 }
 0x743   : > { %3343 = vmatpush2.bf16.msra.mxu1 %v5119_v13  ;;  %3384 = vmatpush2.bf16.msra.mxu0 %v5122_v15 }
 0x744   : > { %3344 = vmatprep.subr.bf16.mxu1 %v5127_v17  ;;  %3385 = vmatprep.subr.bf16.mxu0 %v5130_v19 }
 0x747   : > { %3345 = vmatpush2.bf16.msra.mxu1 %v5125_v16  ;;  %3386 = vmatpush2.bf16.msra.mxu0 %v5128_v18 }
 0x748   : > { %3346 = vmatprep.subr.bf16.mxu1 %v5133_v20  ;;  %3387 = vmatprep.subr.bf16.mxu0 %v5136_v21 }
 0x74b   : > { %3347 = vmatpush2.bf16.msra.mxu1 %v5131_v22  ;;  %3388 = vmatpush2.bf16.msra.mxu0 %v5134_v23 }
 0x74c   : > { %3348 = vmatprep.subr.bf16.mxu1 %v5139_v24  ;;  %3389 = vmatprep.subr.bf16.mxu0 %v5142_v25 }
 0x74f   : > { %3349 = vmatpush2.bf16.msra.mxu1 %v5137_v26  ;;  %3390 = vmatpush2.bf16.msra.mxu0 %v5140_v27 }
 0x750   : > { %3350 = vmatprep.subr.bf16.mxu1 %v5145_v28  ;;  %3391 = vmatprep.subr.bf16.mxu0 %v5148_v31 }
 0x753   : > { %3351 = vmatpush2.bf16.msra.mxu1 %v5143_v32  ;;  %3392 = vmatpush2.bf16.msra.mxu0 %v5146_v33 }
 0x754   : > { %3352 = vmatprep.subr.bf16.mxu1 %v5151_v5  ;;  %3393 = vmatprep.subr.bf16.mxu0 %v5154_v10  ;;  %v2990_v10 = vld [vmem:[%s875_s30] sm:$0x3] }
 0x757   : > { %3353 = vmatpush2.bf16.msra.mxu1 %v5149_v34  ;;  %3394 = vmatpush2.bf16.msra.mxu0 %v5152_v35  ;;  %v2995_v34 = vrot.slane %v2990_v10, %v5716_v11  ;;  %v2999_v35 = vrot.slane %v2990_v10, %v5723_v14 }
 0x7da   : > { %v2838_v41 = vpop.f32.mrf.mxu1  ;;  %v2879_v42 = vpop.f32.mrf.mxu0 }
 0x7db   : > { %v2839_v43 = vadd.f32 %v2838_v41, %v2467_v37  ;;  %v2880_v44 = vadd.f32 %v2879_v42, %v2475_v38 }
 0x7dc   : > { %v2840_v45 = vpop.f32.mrf.mxu1  ;;  %v2881_v46 = vpop.f32.mrf.mxu0 }
 0x7dd   : > { %v2886_v47 = vmul.f32 %v2839_v43, %v2839_v43  ;;  %v2888_v48 = vmul.f32 %v2880_v44, %v2880_v44  ;;  %v2841_v49 = vadd.f32 %v2840_v45, %v2471_v39  ;;  %v2882_v50 = vadd.f32 %v2881_v46, %v2479_v40 }
 0x7de   : > { %v2842_v51 = vpop.f32.mrf.mxu1  ;;  %v2883_v52 = vpop.f32.mrf.mxu0 }
 0x7df   : > { %v2890_v53 = vmul.f32 %v2886_v47, %v2839_v43  ;;  %v2892_v6 = vmul.f32 %v2888_v48, %v2880_v44  ;;  %v2887_v9 = vmul.f32 %v2841_v49, %v2841_v49  ;;  %v2889_v54 = vmul.f32 %v2882_v50, %v2882_v50 }
 0x7e0   : > { %v2843_v55 = vpop.f32.mrf.mxu1  ;;  %v2884_v56 = vpop.f32.mrf.mxu0 }
 0x7e1   : > { %v2894_v8 = vmul.f32 0.044715, %v2890_v53  ;;  %v2896_v12 = vmul.f32 0.044715, %v2892_v6  ;;  %v2891_v57 = vmul.f32 %v2887_v9, %v2841_v49  ;;  %v2893_v58 = vmul.f32 %v2889_v54, %v2882_v50 }
 0x7e3   : > { %v2898_v59 = vadd.f32 %v2894_v8, %v2839_v43  ;;  %v2900_v60 = vadd.f32 %v2896_v12, %v2880_v44  ;;  %v2895_v61 = vmul.f32 0.044715, %v2891_v57  ;;  %v2897_v62 = vmul.f32 0.044715, %v2893_v58 }
 0x7e5   : > { %v2902_v63 = vmul.f32 0.7978846, %v2898_v59  ;;  %v2904_v0 = vmul.f32 0.7978846, %v2900_v60  ;;  %v2899_v1 = vadd.f32 %v2895_v61, %v2841_v49  ;;  %v2901_v2 = vadd.f32 %v2897_v62, %v2882_v50 }
 0x7e7   : > { %5173 = vtanh.f32 %v2902_v63  ;;  %v2903_v3 = vmul.f32 0.7978846, %v2899_v1  ;;  %v2905_v4 = vmul.f32 0.7978846, %v2901_v2 }
 0x7e8   : > { %5175 = vtanh.f32 %v2904_v0 }
 0x7e9   : > { %5177 = vtanh.f32 %v2903_v3 }
 0x7ea   : > { %5179 = vtanh.f32 %v2905_v4 }
 0x7f4   : > { %v5174_v7 = vpop.eup %5173 }
 0x7f5   : > { %v5176_v13 = vpop.eup %5175  ;;  %v2910_v15 = vadd.f32 1.0, %v5174_v7 }
 0x7f6   : > { %v5178_v16 = vpop.eup %5177  ;;  %v2912_v17 = vadd.f32 1.0, %v5176_v13 }
 0x7f7   : > { %v5180_v18 = vpop.eup %5179  ;;  %v2911_v19 = vadd.f32 1.0, %v5178_v16  ;;  %v2914_v20 = vmul.f32 0.5, %v2910_v15 }
 0x7f8   : > { %v2913_v21 = vadd.f32 1.0, %v5180_v18  ;;  %v2916_v22 = vmul.f32 0.5, %v2912_v17 }
 0x7f9   : > { %v2915_v23 = vmul.f32 0.5, %v2911_v19  ;;  %v2918_v25 = vmul.f32 %v2914_v20, %v2839_v43 }
 0x7fa   : > { %v2917_v24 = vmul.f32 0.5, %v2913_v21  ;;  %v2920_v27 = vmul.f32 %v2916_v22, %v2880_v44 }
 0x7fb   : > { %v2919_v26 = vmul.f32 %v2915_v23, %v2841_v49  ;;  %v2922_v33 = vpack.c.bf16 %v2918_v25, %v2918_v25 }
 0x7fc   : > { %v2921_v28 = vmul.f32 %v2917_v24, %v2882_v50  ;;  %v2924_v5 = vpack.c.bf16 %v2920_v27, %v2920_v27 }
 0x7fd   : > { %v2923_v31 = vpack.c.bf16 %v2919_v26, %v2919_v26 }
 0x7fe   : > { %v2925_v32 = vpack.c.bf16 %v2921_v28, %v2921_v28 }
 0x7ff   : > { %3354 = vmatprep.mubr.bf16.mxu1 %v2923_v31 }
 0x800   : > { %3395 = vmatprep.mubr.bf16.mxu0 %v2925_v32  ;;  %3355 = vmatmul.mubr.bf16.vlgmr.msra.gmra.mxu1 %v2922_v33 }
 0x801   : > { %3396 = vmatmul.mubr.bf16.vlgmr.msra.gmra.mxu0 %v2924_v5 }
 0x8c0   : > { %v3356_v36 = vpop.f32.mrf.mxu1 }
 0x8c1   : > { %v3357_v37 = vadd.f32 %v3356_v36, %v2995_v34  ;;  %v3397_v38 = vpop.f32.mrf.mxu0 }
 0x8c2   : > { %v3358_v39 = vpop.f32.mrf.mxu1 }
 0x8c3   : > { %v3398_v40 = vadd.f32 %v3397_v38, %v3357_v37  ;;  %v3359_v41 = vadd.f32 %v3358_v39, %v2999_v35  ;;  %v3399_v42 = vpop.f32.mrf.mxu0 }
 0x8c4   : > { %v3360_v43 = vpop.f32.mrf.mxu1 }
 0x8c5   : > { %v3400_v44 = vadd.f32 %v3399_v42, %v3359_v41  ;;  %v3401_v45 = vpop.f32.mrf.mxu0  ;;  %v3404_v47 = vadd.f32 %v3398_v40, %v5981_v30  ;;  %v3407_v30 = vld [vmem:[%s883_s7] sm:$0x3] }
 0x8c6   : > { %v3361_v46 = vpop.f32.mrf.mxu1  ;;  %v3441_v60 = vrot.slane %v3407_v30, %v5716_v11  ;;  %v3445_v61 = vrot.slane %v3407_v30, %v5723_v14 }
 0x8c7   : > { %v3405_v48 = vadd.f32 %v3400_v44, %v5979_v29  ;;  %v3402_v49 = vpop.f32.mrf.mxu0  ;;  %v3406_v29 = vld [vmem:[%s879_s20] sm:$0x3]  ;;  %s6439_s20 = sld [smem:[#allocation8_spill]] }
 0x8c8   : > { %v3428_v57 = vrot.slane %v3406_v29, %v5716_v11  ;;  %v3432_v58 = vrot.slane %v3406_v29, %v5723_v14 }
 0x8c9   : > { %v3408_v50 = vadd.f32 %v3405_v48, %v3404_v47 }
 0x8cb   : > { %3409 = vadd.xlane.f32.xlu0 %v3408_v50 }
 0x8cd   : > { %p4549_p1 = scmp.ne.s32.totalorder %s6439_s20, 1 }
 0x8ce   : > { %s6440_s1 = sld [smem:[#allocation31_spill]] (!%p4549_p1) }
 0x8cf   : > { %s6442_s19 = sld [smem:[#allocation33_spill]] (!%p4549_p1) }
 0x8d0   : > { %s6443_s15 = sld [smem:[#allocation29_spill]] (!%p4549_p1) }
 0x8d1   : > { %s6444_s0 = sld [smem:[#allocation30_spill]] (!%p4549_p1) }
 0x8d2   : > { %s6445_s25 = sld [smem:[#allocation32_spill]] (!%p4549_p1) }
 0x8d4   : > { %s6441_s8 = smov (!%p4549_p1), %s6440_s1 }
 0x954   : > { %v3410_v51 = vpop.xlane.xlu0 %3409 }
 0x955   : > { %v3411_v52 = vmul.f32 0.00390625, %v3410_v51 }
 0x957   : > { %v3412_v53 = vsub.f32 %v3404_v47, %v3411_v52  ;;  %v3413_v6 = vsub.f32 %v3405_v48, %v3411_v52 }
 0x959   : > { %v3414_v9 = vmul.f32 %v3412_v53, %v3412_v53  ;;  %v3415_v54 = vmul.f32 %v3413_v6, %v3413_v6 }
 0x95b   : > { %v3416_v55 = vadd.f32 %v3415_v54, %v3414_v9 }
 0x95d   : > { %3417 = vadd.xlane.f32.xlu1 %v3416_v55 }
 0x9e6   : > { %v3418_v56 = vpop.xlane.xlu1 %3417 }
 0x9e7   : > { %v3419_v8 = vmul.f32 0.00390625, %v3418_v56 }
 0x9e9   : > { %v3420_v12 = vadd.f32 1e-06, %v3419_v8 }
 0x9eb   : > { %5181 = vrsqrt.f32 %v3420_v12 }
 0x9f8   : > { %v5182_v59 = vpop.eup %5181 }
 0x9f9   : > { %v3422_v62 = vmul.f32 %v5182_v59, %v3412_v53  ;;  %v3423_v63 = vmul.f32 %v5182_v59, %v3413_v6 }
 0x9fb   : > { %v3435_v0 = vmul.f32 %v3428_v57, %v3422_v62  ;;  %v3436_v1 = vmul.f32 %v3432_v58, %v3423_v63  ;;  %3455 = sbr.rel (%p4549_p1) target bundleno = 3272 (0xcc8), region = 104 }
 0x9fd   : > { %v3448_v2 = vadd.f32 %v3441_v60, %v3435_v0  ;;  %v3449_v3 = vadd.f32 %v3445_v61, %v3436_v1 }
 0x9ff   : > { %3450 = vst [vmem:[%s5631_s22] sm:$0xff] %v3448_v2  ;;  %3451 = vst [vmem:[%s5631_s22 + $0x8] sm:$0xff] %v3449_v3 }
 0xa00   : > { %v3458_v4 = vadd.f32 %v3449_v3, %v3448_v2  ;;  %v5185_v7 = vld [vmem:[%s6440_s1 + $0x74] ss:$8 sps:$4 sm:$0xff]   ;;  %v5187_v13 = vld [vmem:[%s6441_s8 + $0x70] ss:$8 sps:$4 sm:$0xff]   ;;  %v5188_v15 = vld [vmem:[%s6441_s8 + $0x64] ss:$8 sps:$4 sm:$0xff]  }
 0xa01   : > { %3706 = vmatprep.subr.bf16.mxu0 %v5185_v7  ;;  %v5190_v16 = vld [vmem:[%s6441_s8 + $0x60] ss:$8 sps:$4 sm:$0xff]   ;;  %v5191_v17 = vld [vmem:[%s6441_s8 + $0x54] ss:$8 sps:$4 sm:$0xff]   ;;  %v5193_v18 = vld [vmem:[%s6441_s8 + $0x50] ss:$8 sps:$4 sm:$0xff]  }
 0xa02   : > { %3459 = vadd.xlane.f32.xlu0 %v3458_v4  ;;  %3707 = vmatpush1.bf16.msra.mxu0 %v5187_v13  ;;  %v5194_v19 = vld [vmem:[%s6441_s8 + $0x44] ss:$8 sps:$4 sm:$0xff]   ;;  %v5196_v20 = vld [vmem:[%s6441_s8 + $0x40] ss:$8 sps:$4 sm:$0xff]   ;;  %v5197_v21 = vld [vmem:[%s6441_s8 + $0x34] ss:$8 sps:$4 sm:$0xff]  }
 0xa03   : > { %3708 = vmatprep.subr.bf16.mxu0 %v5188_v15  ;;  %v5199_v22 = vld [vmem:[%s6441_s8 + $0x30] ss:$8 sps:$4 sm:$0xff]   ;;  %v5200_v23 = vld [vmem:[%s6441_s8 + $0x24] ss:$8 sps:$4 sm:$0xff]   ;;  %v5202_v24 = vld [vmem:[%s6441_s8 + $0x20] ss:$8 sps:$4 sm:$0xff]  }
 0xa04   : > { %v5203_v25 = vld [vmem:[%s6441_s8 + $0x14] ss:$8 sps:$4 sm:$0xff]   ;;  %v5205_v26 = vld [vmem:[%s6441_s8 + $0x10] ss:$8 sps:$4 sm:$0xff]   ;;  %v5206_v27 = vld [vmem:[%s6441_s8 + $0x4] ss:$8 sps:$4 sm:$0xff]  }
 0xa05   : > { %v5208_v28 = vld [vmem:[%s6441_s8] ss:$8 sps:$4 sm:$0xff]   ;;  %v5209_v31 = vld [vmem:[%s6441_s8 + $0xf4] ss:$8 sps:$4 sm:$0xff]   ;;  %v5211_v32 = vld [vmem:[%s6441_s8 + $0xf0] ss:$8 sps:$4 sm:$0xff]  }
 0xa06   : > { %3709 = vmatpush1.bf16.msra.mxu0 %v5190_v16  ;;  %v5212_v33 = vld [vmem:[%s6441_s8 + $0xe4] ss:$8 sps:$4 sm:$0xff]   ;;  %v5214_v39 = vld [vmem:[%s6441_s8 + $0xe0] ss:$8 sps:$4 sm:$0xff]   ;;  %v5215_v40 = vld [vmem:[%s6441_s8 + $0xd4] ss:$8 sps:$4 sm:$0xff]  }
 0xa07   : > { %3710 = vmatprep.subr.bf16.mxu0 %v5191_v17  ;;  %v5217_v41 = vld [vmem:[%s6441_s8 + $0xd0] ss:$8 sps:$4 sm:$0xff]   ;;  %v5218_v42 = vld [vmem:[%s6441_s8 + $0xc4] ss:$8 sps:$4 sm:$0xff]   ;;  %v5220_v43 = vld [vmem:[%s6441_s8 + $0xc0] ss:$8 sps:$4 sm:$0xff]  }
 0xa08   : > { %v5221_v44 = vld [vmem:[%s6441_s8 + $0xb4] ss:$8 sps:$4 sm:$0xff]   ;;  %v5223_v45 = vld [vmem:[%s6441_s8 + $0xb0] ss:$8 sps:$4 sm:$0xff]   ;;  %v5224_v46 = vld [vmem:[%s6441_s8 + $0xa4] ss:$8 sps:$4 sm:$0xff]  }
 0xa09   : > { %v5226_v47 = vld [vmem:[%s6441_s8 + $0xa0] ss:$8 sps:$4 sm:$0xff]   ;;  %v5227_v48 = vld [vmem:[%s6441_s8 + $0x94] ss:$8 sps:$4 sm:$0xff]   ;;  %v5229_v49 = vld [vmem:[%s6441_s8 + $0x90] ss:$8 sps:$4 sm:$0xff]  }
 0xa0a   : > { %3711 = vmatpush1.bf16.msra.mxu0 %v5193_v18  ;;  %v5230_v50 = vld [vmem:[%s6441_s8 + $0x84] ss:$8 sps:$4 sm:$0xff]   ;;  %v5232_v51 = vld [vmem:[%s6441_s8 + $0x80] ss:$8 sps:$4 sm:$0xff]   ;;  %v5233_v52 = vld [vmem:[%s6442_s19 + $0x74] ss:$8 sps:$4 sm:$0xff]  }
 0xa0b   : > { %3712 = vmatprep.subr.bf16.mxu0 %v5194_v19  ;;  %v5235_v53 = vld [vmem:[%s6442_s19 + $0x70] ss:$8 sps:$4 sm:$0xff]   ;;  %v5236_v6 = vld [vmem:[%s6442_s19 + $0x64] ss:$8 sps:$4 sm:$0xff]   ;;  %3941 = vmatprep.subr.bf16.mxu1 %v5233_v52  ;;  %v5238_v9 = vld [vmem:[%s6442_s19 + $0x60] ss:$8 sps:$4 sm:$0xff]  }
 0xa0c   : > { %3942 = vmatpush1.bf16.msra.mxu1 %v5235_v53  ;;  %v5239_v54 = vld [vmem:[%s6442_s19 + $0x54] ss:$8 sps:$4 sm:$0xff]   ;;  %v5241_v55 = vld [vmem:[%s6442_s19 + $0x50] ss:$8 sps:$4 sm:$0xff]   ;;  %v5242_v56 = vld [vmem:[%s6442_s19 + $0x44] ss:$8 sps:$4 sm:$0xff]  }
 0xa0d   : > { %3943 = vmatprep.subr.bf16.mxu1 %v5236_v6  ;;  %v5244_v8 = vld [vmem:[%s6442_s19 + $0x40] ss:$8 sps:$4 sm:$0xff]   ;;  %v5245_v12 = vld [vmem:[%s6442_s19 + $0x34] ss:$8 sps:$4 sm:$0xff]   ;;  %v5247_v29 = vld [vmem:[%s6442_s19 + $0x30] ss:$8 sps:$4 sm:$0xff]  }
 0xa0e   : > { %3713 = vmatpush1.bf16.msra.mxu0 %v5196_v20  ;;  %v5248_v30 = vld [vmem:[%s6442_s19 + $0x24] ss:$8 sps:$4 sm:$0xff]   ;;  %v5250_v57 = vld [vmem:[%s6442_s19 + $0x20] ss:$8 sps:$4 sm:$0xff]   ;;  %v5251_v58 = vld [vmem:[%s6442_s19 + $0x14] ss:$8 sps:$4 sm:$0xff]  }
 0xa0f   : > { %3714 = vmatprep.subr.bf16.mxu0 %v5197_v21  ;;  %v5253_v59 = vld [vmem:[%s6442_s19 + $0x10] ss:$8 sps:$4 sm:$0xff]   ;;  %v5254_v60 = vld [vmem:[%s6442_s19 + $0x4] ss:$8 sps:$4 sm:$0xff]   ;;  %v5256_v61 = vld [vmem:[%s6442_s19] ss:$8 sps:$4 sm:$0xff]  }
 0xa10   : > { %3944 = vmatpush1.bf16.msra.mxu1 %v5238_v9  ;;  %v5257_v62 = vld [vmem:[%s6442_s19 + $0xf4] ss:$8 sps:$4 sm:$0xff]   ;;  %v5259_v63 = vld [vmem:[%s6442_s19 + $0xf0] ss:$8 sps:$4 sm:$0xff]   ;;  %v5260_v0 = vld [vmem:[%s6442_s19 + $0xe4] ss:$8 sps:$4 sm:$0xff]  }
 0xa11   : > { %3945 = vmatprep.subr.bf16.mxu1 %v5239_v54  ;;  %v5262_v1 = vld [vmem:[%s6442_s19 + $0xe0] ss:$8 sps:$4 sm:$0xff]   ;;  %v5266_v4 = vld [vmem:[%s6442_s19 + $0xc4] ss:$8 sps:$4 sm:$0xff]   ;;  %v5269_v13 = vld [vmem:[%s6442_s19 + $0xb4] ss:$8 sps:$4 sm:$0xff]  }
 0xa12   : > { %3715 = vmatpush1.bf16.msra.mxu0 %v5199_v22  ;;  %v5268_v7 = vld [vmem:[%s6442_s19 + $0xc0] ss:$8 sps:$4 sm:$0xff]   ;;  %v5271_v15 = vld [vmem:[%s6442_s19 + $0xb0] ss:$8 sps:$4 sm:$0xff]   ;;  %v5272_v16 = vld [vmem:[%s6442_s19 + $0xa4] ss:$8 sps:$4 sm:$0xff]  }
 0xa13   : > { %3716 = vmatprep.subr.bf16.mxu0 %v5200_v23  ;;  %v5274_v17 = vld [vmem:[%s6442_s19 + $0xa0] ss:$8 sps:$4 sm:$0xff]  }
 0xa14   : > { %3946 = vmatpush1.bf16.msra.mxu1 %v5241_v55  ;;  %v3456_v21 = vld [vmem:[%s6443_s15] sm:$0x3] }
 0xa15   : > { %3947 = vmatprep.subr.bf16.mxu1 %v5242_v56  ;;  %v3457_v22 = vld [vmem:[%s6444_s0] sm:$0x3]  ;;  %v3478_v23 = vrot.slane %v3456_v21, %v5716_v11 }
 0xa16   : > { %3717 = vmatpush1.bf16.msra.mxu0 %v5202_v24  ;;  %v3482_v24 = vrot.slane %v3456_v21, %v5723_v14 }
 0xa17   : > { %3718 = vmatprep.subr.bf16.mxu0 %v5203_v25 }
 0xa18   : > { %3948 = vmatpush1.bf16.msra.mxu1 %v5244_v8 }
 0xa19   : > { %3949 = vmatprep.subr.bf16.mxu1 %v5245_v12 }
 0xa1a   : > { %3719 = vmatpush1.bf16.msra.mxu0 %v5205_v26 }
 0xa1b   : > { %3720 = vmatprep.subr.bf16.mxu0 %v5206_v27  ;;  %v3491_v27 = vrot.slane %v3457_v22, %v5716_v11 }
 0xa1c   : > { %3950 = vmatpush1.bf16.msra.mxu1 %v5247_v29 }
 0xa1d   : > { %3951 = vmatprep.subr.bf16.mxu1 %v5248_v30 }
 0xa1e   : > { %3721 = vmatpush1.bf16.msra.mxu0 %v5208_v28  ;;  %v3495_v28 = vrot.slane %v3457_v22, %v5723_v14 }
 0xa1f   : > { %3722 = vmatprep.subr.bf16.mxu0 %v5209_v31 }
 0xa20   : > { %3952 = vmatpush1.bf16.msra.mxu1 %v5250_v57 }
 0xa21   : > { %3953 = vmatprep.subr.bf16.mxu1 %v5251_v58 }
 0xa22   : > { %3723 = vmatpush2.bf16.msra.mxu0 %v5211_v32 }
 0xa23   : > { %3724 = vmatprep.subr.bf16.mxu0 %v5212_v33 }
 0xa24   : > { %3954 = vmatpush1.bf16.msra.mxu1 %v5253_v59 }
 0xa25   : > { %3955 = vmatprep.subr.bf16.mxu1 %v5254_v60 }
 0xa26   : > { %3725 = vmatpush2.bf16.msra.mxu0 %v5214_v39  ;;  %v5280_v39 = vld [vmem:[%s6442_s19 + $0x80] ss:$8 sps:$4 sm:$0xff]  }
 0xa27   : > { %3726 = vmatprep.subr.bf16.mxu0 %v5215_v40  ;;  %v3534_v40 = vld [vmem:[%s6445_s25] sm:$0x3] }
 0xa28   : > { %3956 = vmatpush1.bf16.msra.mxu1 %v5256_v61 }
 0xa29   : > { %3957 = vmatprep.subr.bf16.mxu1 %v5257_v62 }
 0xa2a   : > { %3727 = vmatpush2.bf16.msra.mxu0 %v5217_v41  ;;  %v3539_v41 = vrot.slane %v3534_v40, %v5716_v11 }
 0xa2b   : > { %3728 = vmatprep.subr.bf16.mxu0 %v5218_v42  ;;  %v3543_v42 = vrot.slane %v3534_v40, %v5723_v14 }
 0xa2c   : > { %3958 = vmatpush2.bf16.msra.mxu1 %v5259_v63 }
 0xa2d   : > { %3959 = vmatprep.subr.bf16.mxu1 %v5260_v0 }
 0xa2e   : > { %3729 = vmatpush2.bf16.msra.mxu0 %v5220_v43 }
 0xa2f   : > { %3730 = vmatprep.subr.bf16.mxu0 %v5221_v44 }
 0xa30   : > { %3960 = vmatpush2.bf16.msra.mxu1 %v5262_v1 }
 0xa32   : > { %3731 = vmatpush2.bf16.msra.mxu0 %v5223_v45 }
 0xa33   : > { %3732 = vmatprep.subr.bf16.mxu0 %v5224_v46 }
 0xa36   : > { %3733 = vmatpush2.bf16.msra.mxu0 %v5226_v47 }
 0xa37   : > { %3734 = vmatprep.subr.bf16.mxu0 %v5227_v48 }
 0xa3a   : > { %3735 = vmatpush2.bf16.msra.mxu0 %v5229_v49 }
 0xa3b   : > { %3736 = vmatprep.subr.bf16.mxu0 %v5230_v50 }
 0xa3e   : > { %3737 = vmatpush2.bf16.msra.mxu0 %v5232_v51 }
 0xa8b   : > { %v3460_v5 = vpop.xlane.xlu0 %3459 }
 0xa8c   : > { %v3461_v10 = vmul.f32 0.00390625, %v3460_v5 }
 0xa8e   : > { %v6139_v34 = vsub.f32 %v3448_v2, %v3461_v10  ;;  %v6141_v35 = vsub.f32 %v3449_v3, %v3461_v10  ;;  %v5263_v2 = vld [vmem:[%s6442_s19 + $0xd4] ss:$8 sps:$4 sm:$0xff]   ;;  %v5265_v3 = vld [vmem:[%s6442_s19 + $0xd0] ss:$8 sps:$4 sm:$0xff]  }
 0xa8f   : > { %3961 = vmatprep.subr.bf16.mxu1 %v5263_v2 }
 0xa90   : > { %v3464_v36 = vmul.f32 %v6139_v34, %v6139_v34  ;;  %v3465_v37 = vmul.f32 %v6141_v35, %v6141_v35  ;;  %3962 = vmatpush2.bf16.msra.mxu1 %v5265_v3 }
 0xa91   : > { %3963 = vmatprep.subr.bf16.mxu1 %v5266_v4 }
 0xa92   : > { %v3466_v38 = vadd.f32 %v3465_v37, %v3464_v36 }
 0xa94   : > { %3467 = vadd.xlane.f32.xlu0 %v3466_v38  ;;  %3964 = vmatpush2.bf16.msra.mxu1 %v5268_v7  ;;  %v5275_v38 = vld [vmem:[%s6442_s19 + $0x94] ss:$8 sps:$4 sm:$0xff]  }
 0xa95   : > { %3965 = vmatprep.subr.bf16.mxu1 %v5269_v13 }
 0xa98   : > { %3966 = vmatpush2.bf16.msra.mxu1 %v5271_v15 }
 0xa99   : > { %3967 = vmatprep.subr.bf16.mxu1 %v5272_v16 }
 0xa9c   : > { %3968 = vmatpush2.bf16.msra.mxu1 %v5274_v17 }
 0xa9d   : > { %3969 = vmatprep.subr.bf16.mxu1 %v5275_v38 }
 0xb1d   : > { %v3468_v18 = vpop.xlane.xlu0 %3467 }
 0xb1e   : > { %v3469_v19 = vmul.f32 0.00390625, %v3468_v18 }
 0xb20   : > { %v3470_v20 = vadd.f32 1e-06, %v3469_v19 }
 0xb22   : > { %5281 = vrsqrt.f32 %v3470_v20 }
 0xb2f   : > { %v5282_v25 = vpop.eup %5281 }
 0xb30   : > { %v3473_v26 = vmul.f32 %v5282_v25, %v6141_v35  ;;  %v3472_v31 = vmul.f32 %v5282_v25, %v6139_v34  ;;  %v5277_v35 = vld [vmem:[%s6442_s19 + $0x90] ss:$8 sps:$4 sm:$0xff]   ;;  %v5278_v34 = vld [vmem:[%s6442_s19 + $0x84] ss:$8 sps:$4 sm:$0xff]  }
 0xb31   : > { %3970 = vmatpush2.bf16.msra.mxu1 %v5277_v35 }
 0xb32   : > { %v3486_v32 = vmul.f32 %v3482_v24, %v3473_v26  ;;  %v3485_v33 = vmul.f32 %v3478_v23, %v3472_v31  ;;  %3971 = vmatprep.subr.bf16.mxu1 %v5278_v34 }
 0xb34   : > { %v3499_v5 = vadd.f32 %v3495_v28, %v3486_v32  ;;  %v3498_v10 = vadd.f32 %v3491_v27, %v3485_v33 }
 0xb35   : > { %3972 = vmatpush2.bf16.msra.mxu1 %v5280_v39 }
 0xb36   : > { %v3501_v36 = vpack.c.bf16 %v3499_v5, %v3499_v5  ;;  %v3500_v37 = vpack.c.bf16 %v3498_v10, %v3498_v10 }
 0xb38   : > { %3738 = vmatprep.mubr.bf16.mxu0 %v3501_v36 }
 0xb39   : > { %3739 = vmatmul.mubr.bf16.vlgmr.msra.gmra.mxu0 %v3500_v37 }
 0xbf9   : > { %v3740_v43 = vpop.f32.mrf.mxu0 }
 0xbfa   : > { %v3741_v44 = vadd.f32 %v3740_v43, %v3539_v41 }
 0xbfb   : > { %v3742_v45 = vpop.f32.mrf.mxu0 }
 0xbfc   : > { %v3743_v46 = vadd.f32 %v3742_v45, %v3543_v42  ;;  %v3747_v49 = vpack.c.bf16 %v3741_v44, %v3741_v44 }
 0xbfd   : > { %v3744_v47 = vpop.f32.mrf.mxu0 }
 0xbfe   : > { %v3748_v48 = vpack.c.bf16 %v3743_v46, %v3743_v46 }
 0xbff   : > { %v3745_v50 = vpop.f32.mrf.mxu0 }
 0xc00   : > { %3973 = vmatprep.mubr.bf16.mxu1 %v3748_v48 }
 0xc01   : > { %3974 = vmatmul.mubr.bf16.vlgmr.msra.gmra.mxu1 %v3747_v49 }
 0xcc1   : > { %v3975_v51 = vpop.f32.mrf.mxu1 }
 0xcc2   : > { %3982 = vst [vmem:[%s5629_s9] sm:$0xff] %v3975_v51 }
 0xcc3   : > { %v3977_v52 = vpop.f32.mrf.mxu1 }
 0xcc4   : > { %3983 = vst [vmem:[%s5629_s9 + $0x8] sm:$0xff] %v3977_v52 }
 0xcc5   : > { %v3979_v53 = vpop.f32.mrf.mxu1 }
 0xcc7   : > { %v3980_v6 = vpop.f32.mrf.mxu1 }
 0xcc8 PF: > { %s6446_s13 = sld [smem:[#allocation9_spill]]  ;;  %s4004_s17 = sshll.u32 %s5631_s22, 4  ;;  %s4005_s17 = int_to_ptr.vmem [resolvable:$true] %s4004_s17 }
 0xcc9   : > { %s6447_s26 = sld [smem:[#allocation6_spill]]  ;;  %s5283_s14 = scalar_lea.vmem %s4005_s17, 256 }
 0xcca   : > { %s6449_s16 = sld [smem:[#allocation34_spill]]  ;;  %p5284_p2 = scmp.ne.s32.totalorder %s4005_s17, %s5283_s14 }
 0xccb   : > { %s5380_s9 = smov [#allocation2]  }
 0xccc   : > { %p5285_p4 = pnand %p5284_p2, %p5535_p3  ;;  %s5287_s24 = sshll.u32 %s5380_s9, 4  ;;  %s5288_s24 = int_to_ptr.vmem [resolvable:$false] %s5287_s24 }
 0xccd   : > { %s5289_s30 = scalar_lea.vmem %s5288_s24, 512  ;;  %p5290_p6 = scmp.lt.s32.totalorder %s4005_s17, %s5288_s24 }
 0xcce   : > { %s4625_s23 = sshll.u32 %s6446_s13, 8  ;;  %p5286_p5 = pneg %p5285_p4 }
 0xccf   : > { %s6450_s29 = sand.u32 1, %s6447_s26   ;;  %p5291_p7 = scmp.lt.s32.totalorder %s5289_s30, %s5283_s14 }
 0xcd0   : > { %s4002_s15 = scalar_lea.hbm %s6449_s16, %s4625_s23  ;;  %s3985_s0 = scalar_lea.sflag [#allocation3], %s6450_s29 }
 0xcd1   : > { %p5292_p8 = por %p5291_p7, %p5290_p6 }
 0xcd3   : > { %p5293_p10 = pnand %p5292_p8, %p5286_p5 }
 0xcd5   : > { %5296 = shalt.err (!%p5293_p10)
}
 0xcd6   : > { %s5297_s27 = scalar_lea.hbm %s4002_s15, 256  ;;  %s5301_s21 = scalar_lea.hbm %s6449_s16, 512 }
 0xcd7   : > { %p5298_p11 = scmp.ne.s32.totalorder %s4002_s15, %s5297_s27  ;;  %p5302_p0 = scmp.lt.s32.totalorder %s4002_s15, %s6449_s16 }
 0xcd8   : > { %p5303_p1 = scmp.lt.s32.totalorder %s5301_s21, %s5297_s27 }
 0xcd9   : > { %p5299_p12 = pnand %p5298_p11, %p5535_p3 }
 0xcda   : > { %p5304_p2 = por %p5303_p1, %p5302_p0 }
 0xcdb   : > { %p5300_p13 = pneg %p5299_p12 }
 0xcdd   : > { %p5305_p4 = pnand %p5304_p2, %p5300_p13 }
 0xcdf   : > { %5308 = shalt.err (!%p5305_p4)
}
 0xce0   : > { %4692 = dma.vmem_to_hbm [thread:$0]  (%p5535_p3), %s4005_s17, 256, %s4002_s15, %s3985_s0  }
 0xce1 PF: > { %s6451_s3 = sld [smem:[#allocation12_spill]] }
 0xce2   : > { %s6452_s1 = sld [smem:[#allocation5_spill]] }
 0xce7   : > { %p4698_p5 = scmp.ge.s32.totalorder %s6451_s3, 2 }
 0xce8   : > { %s4019_s13 = sand.u32 1, %s6452_s1  }
 0xce9   : > { %p4695_p6 = pnand %p4698_p5, %p5545_p9  ;;  %s4020_s26 = scalar_lea.sflag [#allocation3], %s4019_s13 }
 0xceb   : > { %p4696_p7 = pneg %p4695_p6 }
 0xced   : > { %5342 = dma.done.wait (%p4696_p7), %s4020_s26, 256  }
 0xcee   : > { %5344 = vsyncadd (%p4696_p7), %s4020_s26, 4294967040  ;;  %s34_s26 = sadd.s32 1, %s6451_s3   ;;  %s6454_s1 = sld [smem:[#allocation6_spill]] }
 0xcef   : > { %p31_p8 = scmp.ge.s32.totalorder %s34_s26, 6   ;;  %s6455_s22 = sld [smem:[#allocation7_spill]] }
 0xcf0   : > { %s6456_s23 = sld [smem:[#allocation17_spill]] }
 0xcf1   : > { %s6457_s24 = sld [smem:[#allocation10_spill]]  ;;  %33 = sbr.rel (!%p31_p8) target bundleno = 22 (0x16), region = 190 }
 0xcf2   : > { %s6458_s2 = sld [smem:[#allocation11_spill]] }
 0xcf3   : > { %s6459_s25 = sld [smem:[#allocation13_spill]] }
 0xcf4   : > { %s6460_s3 = sld [smem:[#allocation15_spill]] }
 0xcf6   :  { %4033 = vsyncpa [#allocation3], 1 }
 0xcf7   :  { %4035 = vsyncpa [#allocation3 + $0x1], 1 }

</bundles_post_ra>
